<compile_context>
chip_gen: v6e
topology: v6e:2x2x1
jax: 0.10.0
libtpu: 0.0.40
codegen_flags: <defaults>
</compile_context>

<pallas_src>
import jax
import jax.numpy as jnp
from jax import lax
from jax.experimental import pallas as pl
from jax.experimental.pallas import tpu as pltpu


def _make_mixconv_kernel(tap_shifts, flat_pad):
    """Builds the per-image kernel.

    tap_shifts: python list of flat shifts dy*W + dx, tap-major (dh*KM + dw),
                matching the column layout of the folded weight matrix.
    flat_pad:   F = p*W + p, halo width of the flattened VMEM scratch.
    """
    F = flat_pad

    def kernel(x_ref, w_ref, bias_ref, mask_ref, out_ref, xp_ref):
        # x_ref:    (1, C1, HW)     one image; channels on sublanes, HW on lanes
        # w_ref:    (C2, T*C1)      BN-scale-folded weights; column t*C1 + ci
        # bias_ref: (C2, 1)         folded BatchNorm bias
        # mask_ref: (T, HW)         0/1 "same"-padding validity mask per tap
        # out_ref:  (1, C2, HW)
        # xp_ref:   (C1, HW + 2F)   VMEM scratch: flat zero-padded image copy
        _, C1, HW = x_ref.shape
        C2 = w_ref.shape[0]

        x = x_ref[0]                                   # (C1, HW)

        # Flat zero-padded copy of the image in VMEM (no padded array in HBM).
        xp_ref[...] = jnp.zeros_like(xp_ref)
        xp_ref[:, F:F + HW] = x

        w = w_ref[...]                                 # (C2, T*C1)
        acc = jnp.zeros((C2, HW), jnp.float32)
        for t, s in enumerate(tap_shifts):             # static unroll over taps
            # Shifted image: xs[:, hw] = x[:, hw + s] (wrong/zero where the tap
            # falls outside the image; the mask below zeroes those positions).
            xs = xp_ref[:, F + s:F + s + HW]           # (C1, HW) ref read, static offset
            xs = xs * mask_ref[t:t + 1, :]             # zero padding at borders
            # Tiny C1/C2 -> VPU outer-product FMAs instead of 4x4 MXU matmuls.
            for ci in range(C1):
                col = w[:, t * C1 + ci:t * C1 + ci + 1]     # (C2, 1)
                acc = acc + col * xs[ci:ci + 1, :]          # (C2, HW)

        y = acc + bias_ref[...]                        # BatchNorm (inference, folded)
        y = jnp.where(y > 0, y, 0.1 * y)               # LeakyReLU(0.1)
        out_ref[0] = x + y                             # residual: x + act(bn(cat(...)))

    return kernel


def mixconv2d_forward(x_nchw, group_weights, ks, gamma, beta, run_mean, run_var,
                      eps=1e-5):
    """group_weights[g] has PyTorch OIHW layout (c_g, C1, k_g, k_g)."""
    N, C1, H, W = (int(d) for d in x_nchw.shape)
    C2 = sum(int(w.shape[0]) for w in group_weights)
    if C1 != C2:
        raise ValueError("MixConv2d residual add requires C1 == C2 "
                         f"(got C1={C1}, C2={C2})")
    KM = max(int(k) for k in ks)
    p = KM // 2
    HW = H * W
    T = KM * KM
    F = p * W + p                                   # flat halo, covers shifts in [-F, F]

    # ---- fold eval-mode BatchNorm and build combined weights ---------------
    scale = gamma / jnp.sqrt(run_var + eps)                            # (C2,)
    bias = (beta - run_mean * scale).reshape(C2, 1).astype(jnp.float32)

    # (KM, KM, C2, C1): each group's kernel embedded at its centered offset;
    # the torch.cat over groups is implicit in the output-channel layout.
    w_full = jnp.zeros((KM, KM, C2, C1), dtype=jnp.float32)
    off_c = 0
    for wg, kg in zip(group_weights, ks):
        cg = int(wg.shape[0])
        kg = int(kg)
        w_g = jnp.transpose(wg, (2, 3, 0, 1)).astype(jnp.float32)      # (kg,kg,cg,C1)
        o = p - kg // 2
        w_full = w_full.at[o:o + kg, o:o + kg, off_c:off_c + cg, :].set(w_g)
        off_c += cg
    w_full = w_full * scale.reshape(1, 1, C2, 1)                       # fold BN scale
    w_flat = jnp.transpose(w_full, (2, 0, 1, 3)).reshape(C2, T * C1)   # col = t*C1+ci

    # ---- per-tap "same"-padding validity masks over flattened spatial ------
    hh = jnp.arange(H).reshape(H, 1)
    ww = jnp.arange(W).reshape(1, W)
    tap_off = [(dh - p, dw - p) for dh in range(KM) for dw in range(KM)]
    tap_shifts = [dy * W + dx for (dy, dx) in tap_off]
    masks = jnp.stack(
        [((hh + dy >= 0) & (hh + dy < H) & (ww + dx >= 0) & (ww + dx < W))
         .astype(jnp.float32).reshape(HW) for (dy, dx) in tap_off],
        axis=0)                                                        # (T, HW)

    # ---- launch: NCHW kept, spatial flattened onto the lane axis -----------
    x_flat = x_nchw.reshape(N, C1, HW).astype(jnp.float32)             # free reshape

    kernel = _make_mixconv_kernel(tap_shifts, F)
    out_flat = pl.pallas_call(
        kernel,
        out_shape=jax.ShapeDtypeStruct((N, C2, HW), jnp.float32),
        grid=(N,),
        in_specs=[
            pl.BlockSpec((1, C1, HW), lambda n: (n, 0, 0)),
            pl.BlockSpec((C2, T * C1), lambda n: (0, 0)),
            pl.BlockSpec((C2, 1), lambda n: (0, 0)),
            pl.BlockSpec((T, HW), lambda n: (0, 0)),
        ],
        out_specs=pl.BlockSpec((1, C2, HW), lambda n: (n, 0, 0)),
        scratch_shapes=[pltpu.VMEM((C1, HW + 2 * F), jnp.float32)],
        compiler_params=pltpu.CompilerParams(
            dimension_semantics=("parallel",),      # batch axis -> both v7x TCs
            vmem_limit_bytes=32 * 1024 * 1024,      # sized for v7x's smaller VMEM
        ),
    )(x_flat, w_flat, bias, masks)

    return out_flat.reshape(N, C2, H, W)


def ref_forward(x, group_weights, ks, gamma, beta, run_mean, run_var, eps=1e-5):
    """Pure-JAX reference mirroring the PyTorch forward (eval-mode BN)."""
    outs = []
    for wg, kg in zip(group_weights, ks):
        p = kg // 2
        y = lax.conv_general_dilated(
            x, wg, window_strides=(1, 1), padding=((p, p), (p, p)),
            dimension_numbers=("NCHW", "OIHW", "NCHW"))
        outs.append(y)
    y = jnp.concatenate(outs, axis=1)
    sc = (gamma / jnp.sqrt(run_var + eps)).reshape(1, -1, 1, 1)
    bi = (beta - run_mean * gamma / jnp.sqrt(run_var + eps)).reshape(1, -1, 1, 1)
    y = y * sc + bi
    y = jnp.where(y > 0, y, 0.1 * y)
    return x + y


if __name__ == "__main__":
    # Module config (defaults): c1 = c2 = 4, k = (1, 3), s = 1, equal_ch=True.
    c1 = c2 = 4
    ks = (1, 3)
    N, H, W = 2, 16, 16
    groups = len(ks)

    # equal_ch split of c2 output channels (matches torch.linspace(...).floor()).
    idx = jnp.floor(jnp.linspace(0.0, groups - 1e-6, c2))
    c_split = [int((idx == g).sum()) for g in range(groups)]   # -> [2, 2]

    key = jax.random.PRNGKey(0)
    keys = jax.random.split(key, 3 + groups + 4)

    x = jax.random.normal(keys[0], (N, c1, H, W), dtype=jnp.float32)

    group_weights = []
    for g in range(groups):
        wg = 0.1 * jax.random.normal(keys[1 + g],
                                     (c_split[g], c1, ks[g], ks[g]),
                                     dtype=jnp.float32)
        group_weights.append(wg)

    gamma = 1.0 + 0.1 * jax.random.normal(keys[1 + groups], (c2,), dtype=jnp.float32)
    beta = 0.1 * jax.random.normal(keys[2 + groups], (c2,), dtype=jnp.float32)
    run_mean = 0.1 * jax.random.normal(keys[3 + groups], (c2,), dtype=jnp.float32)
    run_var = 0.5 + jnp.abs(jax.random.normal(keys[4 + groups], (c2,),
                                              dtype=jnp.float32))

    out = mixconv2d_forward(x, group_weights, ks, gamma, beta, run_mean, run_var)
    out = jax.block_until_ready(out)

    ref = ref_forward(x, group_weights, ks, gamma, beta, run_mean, run_var)
    ref = jax.block_until_ready(ref)

    assert out.shape == (N, c2, H, W), out.shape
    max_err = float(jnp.max(jnp.abs(out - ref)))
    assert jnp.allclose(out, ref, atol=1e-4, rtol=1e-4), max_err

    print("KERNEL_OK")
</pallas_src>

<mosaic_0001>
module attributes {stable_mosaic.version = 11 : i64} {
  func.func @kernel(%arg0: i32, %arg1: memref<1x4x256xf32, #tpu.memory_space<vmem>>, %arg2: memref<4x36xf32, #tpu.memory_space<vmem>>, %arg3: memref<4x1xf32, #tpu.memory_space<vmem>>, %arg4: memref<9x256xf32, #tpu.memory_space<vmem>>, %arg5: memref<1x4x256xf32, #tpu.memory_space<vmem>>, %arg6: memref<4x290xf32, #tpu.memory_space<vmem>>) attributes {dimension_semantics = [#tpu.dimension_semantics<parallel>], iteration_bounds = array<i64: 2>, scalar_prefetch = 0 : i64, scratch_operands = 1 : i64, tpu.core_type = #tpu.core_type<tc>, window_params = [{transform_indices = @transform_0, window_bounds = array<i64: 1, 4, 256>}, {pipeline_mode = #tpu.pipeline_mode<synchronous>, transform_indices = @transform_1, window_bounds = array<i64: 4, 36>}, {pipeline_mode = #tpu.pipeline_mode<synchronous>, transform_indices = @transform_2, window_bounds = array<i64: 4, 1>}, {pipeline_mode = #tpu.pipeline_mode<synchronous>, transform_indices = @transform_3, window_bounds = array<i64: 9, 256>}, {transform_indices = @transform_4, window_bounds = array<i64: 1, 4, 256>}]} {
    %c0 = arith.constant 0 : index
    %c0_0 = arith.constant 0 : index
    %c0_1 = arith.constant 0 : index
    %0 = vector.load %arg1[%c0, %c0_0, %c0_1] : memref<1x4x256xf32, #tpu.memory_space<vmem>>, vector<1x4x256xf32>
    %1 = vector.shape_cast %0 : vector<1x4x256xf32> to vector<4x256xf32>
    %cst = arith.constant 0.000000e+00 : f32
    %2 = vector.broadcast %cst : f32 to vector<4x290xf32>
    %c0_2 = arith.constant 0 : index
    %c0_3 = arith.constant 0 : index
    %3 = vector.load %arg6[%c0_2, %c0_3] : memref<4x290xf32, #tpu.memory_space<vmem>>, vector<4x290xf32>
    tpu.vector_store %arg6[%c0_2, %c0_3], %2 {strides = array<i32>} : memref<4x290xf32, #tpu.memory_space<vmem>>, vector<4x290xf32>,
    %c0_4 = arith.constant 0 : index
    %c17 = arith.constant 17 : index
    %4 = vector.load %arg6[%c0_4, %c17] : memref<4x290xf32, #tpu.memory_space<vmem>>, vector<4x256xf32>
    tpu.vector_store %arg6[%c0_4, %c17], %1 {strides = array<i32>} : memref<4x290xf32, #tpu.memory_space<vmem>>, vector<4x256xf32>,
    %c0_5 = arith.constant 0 : index
    %c0_6 = arith.constant 0 : index
    %5 = vector.load %arg2[%c0_5, %c0_6] : memref<4x36xf32, #tpu.memory_space<vmem>>, vector<4x36xf32>
    %cst_7 = arith.constant 0.000000e+00 : f32
    %6 = vector.broadcast %cst_7 : f32 to vector<4x256xf32>
    %c0_8 = arith.constant 0 : index
    %c0_9 = arith.constant 0 : index
    %7 = vector.load %arg6[%c0_8, %c0_9] : memref<4x290xf32, #tpu.memory_space<vmem>>, vector<4x256xf32>
    %c0_10 = arith.constant 0 : index
    %c0_11 = arith.constant 0 : index
    %8 = vector.load %arg4[%c0_10, %c0_11] : memref<9x256xf32, #tpu.memory_space<vmem>>, vector<1x256xf32>
    %9 = vector.broadcast %8 : vector<1x256xf32> to vector<4x256xf32>
    %10 = arith.mulf %7, %9 : vector<4x256xf32>
    %11 = vector.extract_strided_slice %5 {offsets = [0, 0], sizes = [4, 1], strides = [1, 1]} : vector<4x36xf32> to vector<4x1xf32>
    %12 = vector.extract_strided_slice %10 {offsets = [0, 0], sizes = [1, 256], strides = [1, 1]} : vector<4x256xf32> to vector<1x256xf32>
    %13 = vector.broadcast %11 : vector<4x1xf32> to vector<4x256xf32>
    %14 = vector.broadcast %12 : vector<1x256xf32> to vector<4x256xf32>
    %15 = arith.mulf %13, %14 : vector<4x256xf32>
    %16 = arith.addf %6, %15 : vector<4x256xf32>
    %17 = vector.extract_strided_slice %5 {offsets = [0, 1], sizes = [4, 1], strides = [1, 1]} : vector<4x36xf32> to vector<4x1xf32>
    %18 = vector.extract_strided_slice %10 {offsets = [1, 0], sizes = [1, 256], strides = [1, 1]} : vector<4x256xf32> to vector<1x256xf32>
    %19 = vector.broadcast %17 : vector<4x1xf32> to vector<4x256xf32>
    %20 = vector.broadcast %18 : vector<1x256xf32> to vector<4x256xf32>
    %21 = arith.mulf %19, %20 : vector<4x256xf32>
    %22 = arith.addf %16, %21 : vector<4x256xf32>
    %23 = vector.extract_strided_slice %5 {offsets = [0, 2], sizes = [4, 1], strides = [1, 1]} : vector<4x36xf32> to vector<4x1xf32>
    %24 = vector.extract_strided_slice %10 {offsets = [2, 0], sizes = [1, 256], strides = [1, 1]} : vector<4x256xf32> to vector<1x256xf32>
    %25 = vector.broadcast %23 : vector<4x1xf32> to vector<4x256xf32>
    %26 = vector.broadcast %24 : vector<1x256xf32> to vector<4x256xf32>
    %27 = arith.mulf %25, %26 : vector<4x256xf32>
    %28 = arith.addf %22, %27 : vector<4x256xf32>
    %29 = vector.extract_strided_slice %5 {offsets = [0, 3], sizes = [4, 1], strides = [1, 1]} : vector<4x36xf32> to vector<4x1xf32>
    %30 = vector.extract_strided_slice %10 {offsets = [3, 0], sizes = [1, 256], strides = [1, 1]} : vector<4x256xf32> to vector<1x256xf32>
    %31 = vector.broadcast %29 : vector<4x1xf32> to vector<4x256xf32>
    %32 = vector.broadcast %30 : vector<1x256xf32> to vector<4x256xf32>
    %33 = arith.mulf %31, %32 : vector<4x256xf32>
    %34 = arith.addf %28, %33 : vector<4x256xf32>
    %c0_12 = arith.constant 0 : index
    %c1 = arith.constant 1 : index
    %35 = vector.load %arg6[%c0_12, %c1] : memref<4x290xf32, #tpu.memory_space<vmem>>, vector<4x256xf32>
    %c1_13 = arith.constant 1 : index
    %c0_14 = arith.constant 0 : index
    %36 = vector.load %arg4[%c1_13, %c0_14] : memref<9x256xf32, #tpu.memory_space<vmem>>, vector<1x256xf32>
    %37 = vector.broadcast %36 : vector<1x256xf32> to vector<4x256xf32>
    %38 = arith.mulf %35, %37 : vector<4x256xf32>
    %39 = vector.extract_strided_slice %5 {offsets = [0, 4], sizes = [4, 1], strides = [1, 1]} : vector<4x36xf32> to vector<4x1xf32>
    %40 = vector.extract_strided_slice %38 {offsets = [0, 0], sizes = [1, 256], strides = [1, 1]} : vector<4x256xf32> to vector<1x256xf32>
    %41 = vector.broadcast %39 : vector<4x1xf32> to vector<4x256xf32>
    %42 = vector.broadcast %40 : vector<1x256xf32> to vector<4x256xf32>
    %43 = arith.mulf %41, %42 : vector<4x256xf32>
    %44 = arith.addf %34, %43 : vector<4x256xf32>
    %45 = vector.extract_strided_slice %5 {offsets = [0, 5], sizes = [4, 1], strides = [1, 1]} : vector<4x36xf32> to vector<4x1xf32>
    %46 = vector.extract_strided_slice %38 {offsets = [1, 0], sizes = [1, 256], strides = [1, 1]} : vector<4x256xf32> to vector<1x256xf32>
    %47 = vector.broadcast %45 : vector<4x1xf32> to vector<4x256xf32>
    %48 = vector.broadcast %46 : vector<1x256xf32> to vector<4x256xf32>
    %49 = arith.mulf %47, %48 : vector<4x256xf32>
    %50 = arith.addf %44, %49 : vector<4x256xf32>
    %51 = vector.extract_strided_slice %5 {offsets = [0, 6], sizes = [4, 1], strides = [1, 1]} : vector<4x36xf32> to vector<4x1xf32>
    %52 = vector.extract_strided_slice %38 {offsets = [2, 0], sizes = [1, 256], strides = [1, 1]} : vector<4x256xf32> to vector<1x256xf32>
    %53 = vector.broadcast %51 : vector<4x1xf32> to vector<4x256xf32>
    %54 = vector.broadcast %52 : vector<1x256xf32> to vector<4x256xf32>
    %55 = arith.mulf %53, %54 : vector<4x256xf32>
    %56 = arith.addf %50, %55 : vector<4x256xf32>
    %57 = vector.extract_strided_slice %5 {offsets = [0, 7], sizes = [4, 1], strides = [1, 1]} : vector<4x36xf32> to vector<4x1xf32>
    %58 = vector.extract_strided_slice %38 {offsets = [3, 0], sizes = [1, 256], strides = [1, 1]} : vector<4x256xf32> to vector<1x256xf32>
    %59 = vector.broadcast %57 : vector<4x1xf32> to vector<4x256xf32>
    %60 = vector.broadcast %58 : vector<1x256xf32> to vector<4x256xf32>
    %61 = arith.mulf %59, %60 : vector<4x256xf32>
    %62 = arith.addf %56, %61 : vector<4x256xf32>
    %c0_15 = arith.constant 0 : index
    %c2 = arith.constant 2 : index
    %63 = vector.load %arg6[%c0_15, %c2] : memref<4x290xf32, #tpu.memory_space<vmem>>, vector<4x256xf32>
    %c2_16 = arith.constant 2 : index
    %c0_17 = arith.constant 0 : index
    %64 = vector.load %arg4[%c2_16, %c0_17] : memref<9x256xf32, #tpu.memory_space<vmem>>, vector<1x256xf32>
    %65 = vector.broadcast %64 : vector<1x256xf32> to vector<4x256xf32>
    %66 = arith.mulf %63, %65 : vector<4x256xf32>
    %67 = vector.extract_strided_slice %5 {offsets = [0, 8], sizes = [4, 1], strides = [1, 1]} : vector<4x36xf32> to vector<4x1xf32>
    %68 = vector.extract_strided_slice %66 {offsets = [0, 0], sizes = [1, 256], strides = [1, 1]} : vector<4x256xf32> to vector<1x256xf32>
    %69 = vector.broadcast %67 : vector<4x1xf32> to vector<4x256xf32>
    %70 = vector.broadcast %68 : vector<1x256xf32> to vector<4x256xf32>
    %71 = arith.mulf %69, %70 : vector<4x256xf32>
    %72 = arith.addf %62, %71 : vector<4x256xf32>
    %73 = vector.extract_strided_slice %5 {offsets = [0, 9], sizes = [4, 1], strides = [1, 1]} : vector<4x36xf32> to vector<4x1xf32>
    %74 = vector.extract_strided_slice %66 {offsets = [1, 0], sizes = [1, 256], strides = [1, 1]} : vector<4x256xf32> to vector<1x256xf32>
    %75 = vector.broadcast %73 : vector<4x1xf32> to vector<4x256xf32>
    %76 = vector.broadcast %74 : vector<1x256xf32> to vector<4x256xf32>
    %77 = arith.mulf %75, %76 : vector<4x256xf32>
    %78 = arith.addf %72, %77 : vector<4x256xf32>
    %79 = vector.extract_strided_slice %5 {offsets = [0, 10], sizes = [4, 1], strides = [1, 1]} : vector<4x36xf32> to vector<4x1xf32>
    %80 = vector.extract_strided_slice %66 {offsets = [2, 0], sizes = [1, 256], strides = [1, 1]} : vector<4x256xf32> to vector<1x256xf32>
    %81 = vector.broadcast %79 : vector<4x1xf32> to vector<4x256xf32>
    %82 = vector.broadcast %80 : vector<1x256xf32> to vector<4x256xf32>
    %83 = arith.mulf %81, %82 : vector<4x256xf32>
    %84 = arith.addf %78, %83 : vector<4x256xf32>
    %85 = vector.extract_strided_slice %5 {offsets = [0, 11], sizes = [4, 1], strides = [1, 1]} : vector<4x36xf32> to vector<4x1xf32>
    %86 = vector.extract_strided_slice %66 {offsets = [3, 0], sizes = [1, 256], strides = [1, 1]} : vector<4x256xf32> to vector<1x256xf32>
    %87 = vector.broadcast %85 : vector<4x1xf32> to vector<4x256xf32>
    %88 = vector.broadcast %86 : vector<1x256xf32> to vector<4x256xf32>
    %89 = arith.mulf %87, %88 : vector<4x256xf32>
    %90 = arith.addf %84, %89 : vector<4x256xf32>
    %c0_18 = arith.constant 0 : index
    %c16 = arith.constant 16 : index
    %91 = vector.load %arg6[%c0_18, %c16] : memref<4x290xf32, #tpu.memory_space<vmem>>, vector<4x256xf32>
    %c3 = arith.constant 3 : index
    %c0_19 = arith.constant 0 : index
    %92 = vector.load %arg4[%c3, %c0_19] : memref<9x256xf32, #tpu.memory_space<vmem>>, vector<1x256xf32>
    %93 = vector.broadcast %92 : vector<1x256xf32> to vector<4x256xf32>
    %94 = arith.mulf %91, %93 : vector<4x256xf32>
    %95 = vector.extract_strided_slice %5 {offsets = [0, 12], sizes = [4, 1], strides = [1, 1]} : vector<4x36xf32> to vector<4x1xf32>
    %96 = vector.extract_strided_slice %94 {offsets = [0, 0], sizes = [1, 256], strides = [1, 1]} : vector<4x256xf32> to vector<1x256xf32>
    %97 = vector.broadcast %95 : vector<4x1xf32> to vector<4x256xf32>
    %98 = vector.broadcast %96 : vector<1x256xf32> to vector<4x256xf32>
    %99 = arith.mulf %97, %98 : vector<4x256xf32>
    %100 = arith.addf %90, %99 : vector<4x256xf32>
    %101 = vector.extract_strided_slice %5 {offsets = [0, 13], sizes = [4, 1], strides = [1, 1]} : vector<4x36xf32> to vector<4x1xf32>
    %102 = vector.extract_strided_slice %94 {offsets = [1, 0], sizes = [1, 256], strides = [1, 1]} : vector<4x256xf32> to vector<1x256xf32>
    %103 = vector.broadcast %101 : vector<4x1xf32> to vector<4x256xf32>
    %104 = vector.broadcast %102 : vector<1x256xf32> to vector<4x256xf32>
    %105 = arith.mulf %103, %104 : vector<4x256xf32>
    %106 = arith.addf %100, %105 : vector<4x256xf32>
    %107 = vector.extract_strided_slice %5 {offsets = [0, 14], sizes = [4, 1], strides = [1, 1]} : vector<4x36xf32> to vector<4x1xf32>
    %108 = vector.extract_strided_slice %94 {offsets = [2, 0], sizes = [1, 256], strides = [1, 1]} : vector<4x256xf32> to vector<1x256xf32>
    %109 = vector.broadcast %107 : vector<4x1xf32> to vector<4x256xf32>
    %110 = vector.broadcast %108 : vector<1x256xf32> to vector<4x256xf32>
    %111 = arith.mulf %109, %110 : vector<4x256xf32>
    %112 = arith.addf %106, %111 : vector<4x256xf32>
    %113 = vector.extract_strided_slice %5 {offsets = [0, 15], sizes = [4, 1], strides = [1, 1]} : vector<4x36xf32> to vector<4x1xf32>
    %114 = vector.extract_strided_slice %94 {offsets = [3, 0], sizes = [1, 256], strides = [1, 1]} : vector<4x256xf32> to vector<1x256xf32>
    %115 = vector.broadcast %113 : vector<4x1xf32> to vector<4x256xf32>
    %116 = vector.broadcast %114 : vector<1x256xf32> to vector<4x256xf32>
    %117 = arith.mulf %115, %116 : vector<4x256xf32>
    %118 = arith.addf %112, %117 : vector<4x256xf32>
    %c0_20 = arith.constant 0 : index
    %c17_21 = arith.constant 17 : index
    %119 = vector.load %arg6[%c0_20, %c17_21] : memref<4x290xf32, #tpu.memory_space<vmem>>, vector<4x256xf32>
    %c4 = arith.constant 4 : index
    %c0_22 = arith.constant 0 : index
    %120 = vector.load %arg4[%c4, %c0_22] : memref<9x256xf32, #tpu.memory_space<vmem>>, vector<1x256xf32>
    %121 = vector.broadcast %120 : vector<1x256xf32> to vector<4x256xf32>
    %122 = arith.mulf %119, %121 : vector<4x256xf32>
    %123 = vector.extract_strided_slice %5 {offsets = [0, 16], sizes = [4, 1], strides = [1, 1]} : vector<4x36xf32> to vector<4x1xf32>
    %124 = vector.extract_strided_slice %122 {offsets = [0, 0], sizes = [1, 256], strides = [1, 1]} : vector<4x256xf32> to vector<1x256xf32>
    %125 = vector.broadcast %123 : vector<4x1xf32> to vector<4x256xf32>
    %126 = vector.broadcast %124 : vector<1x256xf32> to vector<4x256xf32>
    %127 = arith.mulf %125, %126 : vector<4x256xf32>
    %128 = arith.addf %118, %127 : vector<4x256xf32>
    %129 = vector.extract_strided_slice %5 {offsets = [0, 17], sizes = [4, 1], strides = [1, 1]} : vector<4x36xf32> to vector<4x1xf32>
    %130 = vector.extract_strided_slice %122 {offsets = [1, 0], sizes = [1, 256], strides = [1, 1]} : vector<4x256xf32> to vector<1x256xf32>
    %131 = vector.broadcast %129 : vector<4x1xf32> to vector<4x256xf32>
    %132 = vector.broadcast %130 : vector<1x256xf32> to vector<4x256xf32>
    %133 = arith.mulf %131, %132 : vector<4x256xf32>
    %134 = arith.addf %128, %133 : vector<4x256xf32>
    %135 = vector.extract_strided_slice %5 {offsets = [0, 18], sizes = [4, 1], strides = [1, 1]} : vector<4x36xf32> to vector<4x1xf32>
    %136 = vector.extract_strided_slice %122 {offsets = [2, 0], sizes = [1, 256], strides = [1, 1]} : vector<4x256xf32> to vector<1x256xf32>
    %137 = vector.broadcast %135 : vector<4x1xf32> to vector<4x256xf32>
    %138 = vector.broadcast %136 : vector<1x256xf32> to vector<4x256xf32>
    %139 = arith.mulf %137, %138 : vector<4x256xf32>
    %140 = arith.addf %134, %139 : vector<4x256xf32>
    %141 = vector.extract_strided_slice %5 {offsets = [0, 19], sizes = [4, 1], strides = [1, 1]} : vector<4x36xf32> to vector<4x1xf32>
    %142 = vector.extract_strided_slice %122 {offsets = [3, 0], sizes = [1, 256], strides = [1, 1]} : vector<4x256xf32> to vector<1x256xf32>
    %143 = vector.broadcast %141 : vector<4x1xf32> to vector<4x256xf32>
    %144 = vector.broadcast %142 : vector<1x256xf32> to vector<4x256xf32>
    %145 = arith.mulf %143, %144 : vector<4x256xf32>
    %146 = arith.addf %140, %145 : vector<4x256xf32>
    %c0_23 = arith.constant 0 : index
    %c18 = arith.constant 18 : index
    %147 = vector.load %arg6[%c0_23, %c18] : memref<4x290xf32, #tpu.memory_space<vmem>>, vector<4x256xf32>
    %c5 = arith.constant 5 : index
    %c0_24 = arith.constant 0 : index
    %148 = vector.load %arg4[%c5, %c0_24] : memref<9x256xf32, #tpu.memory_space<vmem>>, vector<1x256xf32>
    %149 = vector.broadcast %148 : vector<1x256xf32> to vector<4x256xf32>
    %150 = arith.mulf %147, %149 : vector<4x256xf32>
    %151 = vector.extract_strided_slice %5 {offsets = [0, 20], sizes = [4, 1], strides = [1, 1]} : vector<4x36xf32> to vector<4x1xf32>
    %152 = vector.extract_strided_slice %150 {offsets = [0, 0], sizes = [1, 256], strides = [1, 1]} : vector<4x256xf32> to vector<1x256xf32>
    %153 = vector.broadcast %151 : vector<4x1xf32> to vector<4x256xf32>
    %154 = vector.broadcast %152 : vector<1x256xf32> to vector<4x256xf32>
    %155 = arith.mulf %153, %154 : vector<4x256xf32>
    %156 = arith.addf %146, %155 : vector<4x256xf32>
    %157 = vector.extract_strided_slice %5 {offsets = [0, 21], sizes = [4, 1], strides = [1, 1]} : vector<4x36xf32> to vector<4x1xf32>
    %158 = vector.extract_strided_slice %150 {offsets = [1, 0], sizes = [1, 256], strides = [1, 1]} : vector<4x256xf32> to vector<1x256xf32>
    %159 = vector.broadcast %157 : vector<4x1xf32> to vector<4x256xf32>
    %160 = vector.broadcast %158 : vector<1x256xf32> to vector<4x256xf32>
    %161 = arith.mulf %159, %160 : vector<4x256xf32>
    %162 = arith.addf %156, %161 : vector<4x256xf32>
    %163 = vector.extract_strided_slice %5 {offsets = [0, 22], sizes = [4, 1], strides = [1, 1]} : vector<4x36xf32> to vector<4x1xf32>
    %164 = vector.extract_strided_slice %150 {offsets = [2, 0], sizes = [1, 256], strides = [1, 1]} : vector<4x256xf32> to vector<1x256xf32>
    %165 = vector.broadcast %163 : vector<4x1xf32> to vector<4x256xf32>
    %166 = vector.broadcast %164 : vector<1x256xf32> to vector<4x256xf32>
    %167 = arith.mulf %165, %166 : vector<4x256xf32>
    %168 = arith.addf %162, %167 : vector<4x256xf32>
    %169 = vector.extract_strided_slice %5 {offsets = [0, 23], sizes = [4, 1], strides = [1, 1]} : vector<4x36xf32> to vector<4x1xf32>
    %170 = vector.extract_strided_slice %150 {offsets = [3, 0], sizes = [1, 256], strides = [1, 1]} : vector<4x256xf32> to vector<1x256xf32>
    %171 = vector.broadcast %169 : vector<4x1xf32> to vector<4x256xf32>
    %172 = vector.broadcast %170 : vector<1x256xf32> to vector<4x256xf32>
    %173 = arith.mulf %171, %172 : vector<4x256xf32>
    %174 = arith.addf %168, %173 : vector<4x256xf32>
    %c0_25 = arith.constant 0 : index
    %c32 = arith.constant 32 : index
    %175 = vector.load %arg6[%c0_25, %c32] : memref<4x290xf32, #tpu.memory_space<vmem>>, vector<4x256xf32>
    %c6 = arith.constant 6 : index
    %c0_26 = arith.constant 0 : index
    %176 = vector.load %arg4[%c6, %c0_26] : memref<9x256xf32, #tpu.memory_space<vmem>>, vector<1x256xf32>
    %177 = vector.broadcast %176 : vector<1x256xf32> to vector<4x256xf32>
    %178 = arith.mulf %175, %177 : vector<4x256xf32>
    %179 = vector.extract_strided_slice %5 {offsets = [0, 24], sizes = [4, 1], strides = [1, 1]} : vector<4x36xf32> to vector<4x1xf32>
    %180 = vector.extract_strided_slice %178 {offsets = [0, 0], sizes = [1, 256], strides = [1, 1]} : vector<4x256xf32> to vector<1x256xf32>
    %181 = vector.broadcast %179 : vector<4x1xf32> to vector<4x256xf32>
    %182 = vector.broadcast %180 : vector<1x256xf32> to vector<4x256xf32>
    %183 = arith.mulf %181, %182 : vector<4x256xf32>
    %184 = arith.addf %174, %183 : vector<4x256xf32>
    %185 = vector.extract_strided_slice %5 {offsets = [0, 25], sizes = [4, 1], strides = [1, 1]} : vector<4x36xf32> to vector<4x1xf32>
    %186 = vector.extract_strided_slice %178 {offsets = [1, 0], sizes = [1, 256], strides = [1, 1]} : vector<4x256xf32> to vector<1x256xf32>
    %187 = vector.broadcast %185 : vector<4x1xf32> to vector<4x256xf32>
    %188 = vector.broadcast %186 : vector<1x256xf32> to vector<4x256xf32>
    %189 = arith.mulf %187, %188 : vector<4x256xf32>
    %190 = arith.addf %184, %189 : vector<4x256xf32>
    %191 = vector.extract_strided_slice %5 {offsets = [0, 26], sizes = [4, 1], strides = [1, 1]} : vector<4x36xf32> to vector<4x1xf32>
    %192 = vector.extract_strided_slice %178 {offsets = [2, 0], sizes = [1, 256], strides = [1, 1]} : vector<4x256xf32> to vector<1x256xf32>
    %193 = vector.broadcast %191 : vector<4x1xf32> to vector<4x256xf32>
    %194 = vector.broadcast %192 : vector<1x256xf32> to vector<4x256xf32>
    %195 = arith.mulf %193, %194 : vector<4x256xf32>
    %196 = arith.addf %190, %195 : vector<4x256xf32>
    %197 = vector.extract_strided_slice %5 {offsets = [0, 27], sizes = [4, 1], strides = [1, 1]} : vector<4x36xf32> to vector<4x1xf32>
    %198 = vector.extract_strided_slice %178 {offsets = [3, 0], sizes = [1, 256], strides = [1, 1]} : vector<4x256xf32> to vector<1x256xf32>
    %199 = vector.broadcast %197 : vector<4x1xf32> to vector<4x256xf32>
    %200 = vector.broadcast %198 : vector<1x256xf32> to vector<4x256xf32>
    %201 = arith.mulf %199, %200 : vector<4x256xf32>
    %202 = arith.addf %196, %201 : vector<4x256xf32>
    %c0_27 = arith.constant 0 : index
    %c33 = arith.constant 33 : index
    %203 = vector.load %arg6[%c0_27, %c33] : memref<4x290xf32, #tpu.memory_space<vmem>>, vector<4x256xf32>
    %c7 = arith.constant 7 : index
    %c0_28 = arith.constant 0 : index
    %204 = vector.load %arg4[%c7, %c0_28] : memref<9x256xf32, #tpu.memory_space<vmem>>, vector<1x256xf32>
    %205 = vector.broadcast %204 : vector<1x256xf32> to vector<4x256xf32>
    %206 = arith.mulf %203, %205 : vector<4x256xf32>
    %207 = vector.extract_strided_slice %5 {offsets = [0, 28], sizes = [4, 1], strides = [1, 1]} : vector<4x36xf32> to vector<4x1xf32>
    %208 = vector.extract_strided_slice %206 {offsets = [0, 0], sizes = [1, 256], strides = [1, 1]} : vector<4x256xf32> to vector<1x256xf32>
    %209 = vector.broadcast %207 : vector<4x1xf32> to vector<4x256xf32>
    %210 = vector.broadcast %208 : vector<1x256xf32> to vector<4x256xf32>
    %211 = arith.mulf %209, %210 : vector<4x256xf32>
    %212 = arith.addf %202, %211 : vector<4x256xf32>
    %213 = vector.extract_strided_slice %5 {offsets = [0, 29], sizes = [4, 1], strides = [1, 1]} : vector<4x36xf32> to vector<4x1xf32>
    %214 = vector.extract_strided_slice %206 {offsets = [1, 0], sizes = [1, 256], strides = [1, 1]} : vector<4x256xf32> to vector<1x256xf32>
    %215 = vector.broadcast %213 : vector<4x1xf32> to vector<4x256xf32>
    %216 = vector.broadcast %214 : vector<1x256xf32> to vector<4x256xf32>
    %217 = arith.mulf %215, %216 : vector<4x256xf32>
    %218 = arith.addf %212, %217 : vector<4x256xf32>
    %219 = vector.extract_strided_slice %5 {offsets = [0, 30], sizes = [4, 1], strides = [1, 1]} : vector<4x36xf32> to vector<4x1xf32>
    %220 = vector.extract_strided_slice %206 {offsets = [2, 0], sizes = [1, 256], strides = [1, 1]} : vector<4x256xf32> to vector<1x256xf32>
    %221 = vector.broadcast %219 : vector<4x1xf32> to vector<4x256xf32>
    %222 = vector.broadcast %220 : vector<1x256xf32> to vector<4x256xf32>
    %223 = arith.mulf %221, %222 : vector<4x256xf32>
    %224 = arith.addf %218, %223 : vector<4x256xf32>
    %225 = vector.extract_strided_slice %5 {offsets = [0, 31], sizes = [4, 1], strides = [1, 1]} : vector<4x36xf32> to vector<4x1xf32>
    %226 = vector.extract_strided_slice %206 {offsets = [3, 0], sizes = [1, 256], strides = [1, 1]} : vector<4x256xf32> to vector<1x256xf32>
    %227 = vector.broadcast %225 : vector<4x1xf32> to vector<4x256xf32>
    %228 = vector.broadcast %226 : vector<1x256xf32> to vector<4x256xf32>
    %229 = arith.mulf %227, %228 : vector<4x256xf32>
    %230 = arith.addf %224, %229 : vector<4x256xf32>
    %c0_29 = arith.constant 0 : index
    %c34 = arith.constant 34 : index
    %231 = vector.load %arg6[%c0_29, %c34] : memref<4x290xf32, #tpu.memory_space<vmem>>, vector<4x256xf32>
    %c8 = arith.constant 8 : index
    %c0_30 = arith.constant 0 : index
    %232 = vector.load %arg4[%c8, %c0_30] : memref<9x256xf32, #tpu.memory_space<vmem>>, vector<1x256xf32>
    %233 = vector.broadcast %232 : vector<1x256xf32> to vector<4x256xf32>
    %234 = arith.mulf %231, %233 : vector<4x256xf32>
    %235 = vector.extract_strided_slice %5 {offsets = [0, 32], sizes = [4, 1], strides = [1, 1]} : vector<4x36xf32> to vector<4x1xf32>
    %236 = vector.extract_strided_slice %234 {offsets = [0, 0], sizes = [1, 256], strides = [1, 1]} : vector<4x256xf32> to vector<1x256xf32>
    %237 = vector.broadcast %235 : vector<4x1xf32> to vector<4x256xf32>
    %238 = vector.broadcast %236 : vector<1x256xf32> to vector<4x256xf32>
    %239 = arith.mulf %237, %238 : vector<4x256xf32>
    %240 = arith.addf %230, %239 : vector<4x256xf32>
    %241 = vector.extract_strided_slice %5 {offsets = [0, 33], sizes = [4, 1], strides = [1, 1]} : vector<4x36xf32> to vector<4x1xf32>
    %242 = vector.extract_strided_slice %234 {offsets = [1, 0], sizes = [1, 256], strides = [1, 1]} : vector<4x256xf32> to vector<1x256xf32>
    %243 = vector.broadcast %241 : vector<4x1xf32> to vector<4x256xf32>
    %244 = vector.broadcast %242 : vector<1x256xf32> to vector<4x256xf32>
    %245 = arith.mulf %243, %244 : vector<4x256xf32>
    %246 = arith.addf %240, %245 : vector<4x256xf32>
    %247 = vector.extract_strided_slice %5 {offsets = [0, 34], sizes = [4, 1], strides = [1, 1]} : vector<4x36xf32> to vector<4x1xf32>
    %248 = vector.extract_strided_slice %234 {offsets = [2, 0], sizes = [1, 256], strides = [1, 1]} : vector<4x256xf32> to vector<1x256xf32>
    %249 = vector.broadcast %247 : vector<4x1xf32> to vector<4x256xf32>
    %250 = vector.broadcast %248 : vector<1x256xf32> to vector<4x256xf32>
    %251 = arith.mulf %249, %250 : vector<4x256xf32>
    %252 = arith.addf %246, %251 : vector<4x256xf32>
    %253 = vector.extract_strided_slice %5 {offsets = [0, 35], sizes = [4, 1], strides = [1, 1]} : vector<4x36xf32> to vector<4x1xf32>
    %254 = vector.extract_strided_slice %234 {offsets = [3, 0], sizes = [1, 256], strides = [1, 1]} : vector<4x256xf32> to vector<1x256xf32>
    %255 = vector.broadcast %253 : vector<4x1xf32> to vector<4x256xf32>
    %256 = vector.broadcast %254 : vector<1x256xf32> to vector<4x256xf32>
    %257 = arith.mulf %255, %256 : vector<4x256xf32>
    %258 = arith.addf %252, %257 : vector<4x256xf32>
    %c0_31 = arith.constant 0 : index
    %c0_32 = arith.constant 0 : index
    %259 = vector.load %arg3[%c0_31, %c0_32] : memref<4x1xf32, #tpu.memory_space<vmem>>, vector<4x1xf32>
    %260 = vector.broadcast %259 : vector<4x1xf32> to vector<4x256xf32>
    %261 = arith.addf %258, %260 : vector<4x256xf32>
    %cst_33 = arith.constant 0.000000e+00 : f32
    %262 = vector.broadcast %cst_33 : f32 to vector<4x256xf32>
    %263 = arith.cmpf ogt, %261, %262 : vector<4x256xf32>
    %cst_34 = arith.constant 1.000000e-01 : f32
    %264 = vector.broadcast %cst_34 : f32 to vector<4x256xf32>
    %265 = arith.mulf %264, %261 : vector<4x256xf32>
    %266 = arith.select %263, %261, %265 : vector<4x256xi1>, vector<4x256xf32>
    %267 = arith.addf %1, %266 : vector<4x256xf32>
    %c0_35 = arith.constant 0 : index
    %c0_36 = arith.constant 0 : index
    %c0_37 = arith.constant 0 : index
    %268 = vector.load %arg5[%c0_35, %c0_36, %c0_37] : memref<1x4x256xf32, #tpu.memory_space<vmem>>, vector<1x4x256xf32>
    %269 = vector.shape_cast %268 : vector<1x4x256xf32> to vector<4x256xf32>
    %270 = vector.shape_cast %267 : vector<4x256xf32> to vector<1x4x256xf32>
    tpu.vector_store %arg5[%c0_35, %c0_36, %c0_37], %270 {strides = array<i32>} : memref<1x4x256xf32, #tpu.memory_space<vmem>>, vector<1x4x256xf32>,
    return
  }
  func.func @transform_0(%arg0: i32) -> (i32, i32, i32) {
    %c0_i32 = arith.constant 0 : i32
    %c0_i32_0 = arith.constant 0 : i32
    %c0_i32_1 = arith.constant 0 : i32
    return %arg0, %c0_i32, %c0_i32_0 : i32, i32, i32
  }
  func.func @transform_1(%arg0: i32) -> (i32, i32) {
    %c0_i32 = arith.constant 0 : i32
    %c0_i32_0 = arith.constant 0 : i32
    %c0_i32_1 = arith.constant 0 : i32
    return %c0_i32, %c0_i32_0 : i32, i32
  }
  func.func @transform_2(%arg0: i32) -> (i32, i32) {
    %c0_i32 = arith.constant 0 : i32
    %c0_i32_0 = arith.constant 0 : i32
    %c0_i32_1 = arith.constant 0 : i32
    return %c0_i32, %c0_i32_0 : i32, i32
  }
  func.func @transform_3(%arg0: i32) -> (i32, i32) {
    %c0_i32 = arith.constant 0 : i32
    %c0_i32_0 = arith.constant 0 : i32
    %c0_i32_1 = arith.constant 0 : i32
    return %c0_i32, %c0_i32_0 : i32, i32
  }
  func.func @transform_4(%arg0: i32) -> (i32, i32, i32) {
    %c0_i32 = arith.constant 0 : i32
    %c0_i32_0 = arith.constant 0 : i32
    %c0_i32_1 = arith.constant 0 : i32
    return %arg0, %c0_i32, %c0_i32_0 : i32, i32, i32
  }
}

</mosaic_0001>

<bundles_post_ra>
// kernel: tpu_custom_call.1
= control target key start
LH: loop header
LB: loop body
LE: loop exit
PB: predicated region body
PF: predicated region fallthrough
CT: control target
= control target key end

     0   :  { %9 = vsyncpa [#allocation4], 0  ;;  %s3673_s0 = inlined_call_operand.hbm [shape: f32[2,4,256], index: 0, kind: input, shape index: {}]   ;;  %s3674_s1 = inlined_call_operand.vmem [shape: f32[4,36], index: 1, kind: input, shape index: {}]   ;;  %s3675_s2 = inlined_call_operand.vmem [shape: f32[4,1], index: 2, kind: input, shape index: {}]   ;;  %s3676_s3 = inlined_call_operand.hbm [shape: f32[9,256], index: 3, kind: input, shape index: {}]   ;;  %s3677_s4 = inlined_call_operand.hbm [shape: f32[2,4,256], index: 4, kind: output, shape index: {}]  }
   0x1   :  { %11 = vsyncpa [#allocation4 + $0x1], 0 }
   0x2   :  { %12 = vsyncpa [#allocation7], 0 }
   0x3   :  { %13 = vsyncpa [#allocation5], 0 }
   0x4   :  { %15 = vsyncpa [#allocation5 + $0x1], 0  ;;  %s2634_s15 = smov 0   ;;  %s2636_s16 = smov 0  }
   0x5   :  { %s2638_s17 = smov 0   ;;  %s2640_s18 = smov 0  }
   0x6 LB: > { %s2655_s19 = sadd.s32 4294967295, %s2549_s18   ;;  %s2258_s20 = sadd.s32 4294967294, %s2549_s18   ;;  %s2549_s18 = sphi %s2640_s18, %s3766_s18   ;;  %s2545_s17 = sphi %s2638_s17, %s3765_s17   ;;  %s2541_s16 = sphi %s2636_s16, %s3764_s16   ;;  %s2537_s15 = sphi %s2634_s15, %s3763_s15  }
   0x7   : > { %p41_p0 = scmp.ne.s32.totalorder %s2541_s16, %s2537_s15  ;;  %p3678_p1 = scmp.eq.s32.totalorder %s2655_s19, 0 }
   0x8   : > { %p134_p3 = scmp.eq.s32.totalorder %s2258_s20, 1  ;;  %p2259_p5 = scmp.ge.s32.totalorder %s2549_s18, 1 }
   0x9   : > { %p2664_p4 = por %p3678_p1, %p41_p0  ;;  %p141_p7 = scmp.lt.s32.totalorder %s2549_s18, 3 }
   0xa   : > { %p2669_p6 = por %p134_p3, %p41_p0  ;;  %s2551_s24 = smov [#allocation6]  }
   0xb   : > { %s3702_s21 = scalar_select %p2664_p4, 1, 0 }
   0xc   : > { %s3703_s22 = scalar_select %p2669_p6, 1, 0 }
   0xd   : > { %p2674_p8 = pnand %p2259_p5, %p141_p7  ;;  %s159_s25 = sshll.u32 %s2551_s24, 4  ;;  %s160_s25 = int_to_ptr.vmem [resolvable:$true] %s159_s25 }
   0xe   : > { %s2688_s27 = sadd.s32 1, %s2549_s18   ;;  %s28_s28 = sadd.s32 1, %s2545_s17 }
   0xf   : > { %s3704_s23 = scalar_select %p2674_p8, 1, 0 }
  0x10   : > { %p2284_p9 = pneg %p2674_p8  ;;  %s25_s29 = ssub.s32 %s2549_s18, %s2688_s27 }
  0x11   : > { %s2438_s30 = scalar_lea.vmem %s160_s25, 512  ;;  %p2446_p5 = scmp.lt.s32.totalorder %s160_s25, %s160_s25 }
  0x12   : > { %p2683_p11 = pnand %p2284_p9, %p3678_p1  ;;  %p2439_p13 = scmp.ne.s32.totalorder %s160_s25, %s2438_s30 }
  0x13   : > { %p2447_p7 = scmp.lt.s32.totalorder %s2438_s30, %s2438_s30 }
  0x14   : > { %p2429_p12 = pneg %p2683_p11 }
  0x15   : > { %p2448_p10 = por %p2447_p7, %p2446_p5 }
  0x16   : > { %p2441_p0 = pnand %p2439_p13, %p2429_p12 }
  0x18   : > { %p2442_p3 = pneg %p2441_p0 }
  0x1a   : > { %p2449_p2 = pnand %p2448_p10, %p2442_p3 }
  0x1c   : > { %2452 = shalt.err (!%p2449_p2)
}
  0x1d   : > { %s2552_s5 = smov 256   ;;  %s2553_s6 = smov 16  }
  0x1e   : > { %2287 = dma.hbm_to_vmem [thread:$0]  (!%p2683_p11), %s3676_s3, 512, %s160_s25, [#allocation7], %s2552_s5, %s2552_s5, %s2553_s6  }
  0x1f   : > { %p26_p9 = scmp.eq.s32.totalorder %s25_s29, 0  ;;  %p35_p12 = scmp.ne.s32.totalorder %s2545_s17, %s2541_s16 }
  0x20   : > { %p36_p10 = scmp.eq.s32.totalorder %s2549_s18, 0  ;;  %p2297_p2 = scmp.lt.s32.totalorder %s2549_s18, 2 }
  0x21   : > { %s2705_s9 = scalar_select %p26_p9, %s2545_s17, %s28_s28  }
  0x22   : > { %p37_p13 = por %p36_p10, %p35_p12  ;;  %p3706_p0 = scmp.eq.s32.totalorder %s2655_s19, 1 }
  0x23   : > { %s173_s11 = sand.u32 1, %s2545_s17   ;;  %s2274_s12 = sshll.u32 %s2549_s18, 7 }
  0x24   : > { %p2709_p3 = por %p3706_p0, %p35_p12  ;;  %s2262_s13 = sshll.u32 %s173_s11, 3 }
  0x25   : > { %s2718_s24 = scalar_lea.hbm %s3673_s0, %s2274_s12  ;;  %s177_s25 = scalar_lea.vmem [#allocation3], %s2262_s13 }
  0x26   : > { %s3707_s10 = scalar_select %p2709_p3, 1, 0 }
  0x27   : > { %s185_s26 = sshll.u32 %s177_s25, 4  ;;  %p2720_p11 = pnand %p2297_p2, %p37_p13  ;;  %s186_s26 = int_to_ptr.vmem [resolvable:$true] %s185_s26 }
  0x28   : > { %s174_s29 = scalar_lea.sflag [#allocation4], %s173_s11  ;;  %s2453_s30 = scalar_lea.hbm %s2718_s24, 128 }
  0x29   : > { %p2454_p5 = scmp.ne.s32.totalorder %s2718_s24, %s2453_s30  ;;  %p2455_p7 = pneg %p2720_p11 }
  0x2a   : > { %s2458_s7 = scalar_lea.hbm %s3673_s0, 256  ;;  %p2459_p10 = scmp.lt.s32.totalorder %s2718_s24, %s3673_s0 }
  0x2b   : > { %p2456_p9 = pnand %p2455_p7, %p2454_p5  ;;  %p2460_p2 = scmp.lt.s32.totalorder %s2458_s7, %s2453_s30 }
  0x2d   : > { %p2457_p12 = pneg %p2456_p9  ;;  %p2461_p13 = por %p2460_p2, %p2459_p10 }
  0x2f   : > { %p2462_p0 = pnand %p2461_p13, %p2457_p12 }
  0x31   : > { %2465 = shalt.err (!%p2462_p0)
}
  0x32   : > { %s2466_s13 = scalar_lea.vmem %s186_s26, 128  ;;  %s2554_s11 = smov [#allocation3]  }
  0x33   : > { %p2467_p1 = scmp.ne.s32.totalorder %s186_s26, %s2466_s13  ;;  %s2471_s14 = sshll.u32 %s2554_s11, 4  ;;  %s2472_s14 = int_to_ptr.vmem [resolvable:$false] %s2471_s14 }
  0x34   : > { %s2473_s20 = scalar_lea.vmem %s2472_s14, 256  ;;  %p2474_p5 = scmp.lt.s32.totalorder %s186_s26, %s2472_s14 }
  0x35   : > { %p2469_p6 = pnand %p2467_p1, %p2455_p7  ;;  %p2475_p9 = scmp.lt.s32.totalorder %s2473_s20, %s2466_s13 }
  0x37   : > { %p2470_p3 = pneg %p2469_p6  ;;  %p2476_p4 = por %p2475_p9, %p2474_p5 }
  0x39   : > { %p2477_p8 = pnand %p2476_p4, %p2470_p3 }
  0x3b   : > { %2480 = shalt.err (!%p2477_p8)
}
  0x3c   : > { %2291 = dma.hbm_to_vmem [thread:$0]  (!%p2720_p11), %s2718_s24, 128, %s186_s26, %s174_s29  }
  0x3d   : > { %p3709_p12 = scmp.ne.s32.totalorder %s3704_s23, 0 }
  0x3f   : > { %194 = sbr.rel (%p3709_p12) target bundleno = 929 (0x3a1), region = 36 }
  0x44   : > { %s2741_s25 = sand.u32 1, %s2541_s16   ;;  %p3710_p1 = scmp.ne.s32.totalorder %s3702_s21, 0 }
  0x45   : > { %s2266_s30 = sshll.u32 %s2741_s25, 3  ;;  %s197_s5 = scalar_lea.sflag [#allocation4], %s2741_s25 }
  0x46   : > { %s2747_s6 = scalar_lea.vmem [#allocation3], %s2266_s30 }
  0x47   : > { %2524 = dma.done.wait (%p3710_p1), %s197_s5, 128  }
  0x48   : > { %2526 = vsyncadd (%p3710_p1), %s197_s5, 4294967168  ;;  %p3711_p4 = scmp.eq.s32.totalorder %s2655_s19, 0 }
  0x4a   : > { %2528 = dma.done.wait (%p3711_p4), [#allocation7], 512   ;;  %p3712_p6 = pmov %p3711_p4 }
  0x4b   : > { %v251_v0 = vlaneseq  ;;  %v2555_v1 = vmov 1   ;;  %v2556_v3 = vmov 8   ;;  %vm231_vm0 = vcmask 273408   ;;  %v2768_v7 = vld [vmem:[%s3674_s1] sm:$0xf]  ;;  %v229_v8 = vld [vmem:[%s2747_s6] sm:$0xff] }
  0x4c   : > { %2530 = vsyncadd (%p3712_p6), [#allocation7], 4294966784  ;;  %2388 = vset.pattern.permute.xlu1 %v2555_v1  ;;  %2395 = vset.pattern.permute.xlu0 %v2556_v3  ;;  %v2557_v6 = vmov 0.0   ;;  %v371_v9 = vld [vmem:[#allocation6 + $0x1] ss:$8 sm:$0x3] }
  0x4d   : > { %v2757_v2 = vshrl.u32 %v251_v0, 7  ;;  %230 = vst [vmem:[#allocation2] sm:$0xff] %v2557_v6  ;;  %232 = vst.msk [vmem:[#allocation2 + $0x8] sm:$0xf] %vm231_vm0, %v2557_v6  ;;  %291 = vperm.xlu1 %2388, %v2768_v7   ;;  %s2558_s24 = smov 17   ;;  %v2559_v13 = vmov 2  }
  0x4e   : > { %234 = vrot.lane.b32.xlu0 %v229_v8, %s2558_s24  ;;  %s2560_s26 = smov 1   ;;  %v2561_v14 = vmov 3   ;;  %v2562_v15 = vmov 12   ;;  %v2563_v16 = vmov 4   ;;  %v2564_v17 = vmov 16   ;;  %s2568_s28 = smov 2  }
  0x4f   : > { %v2760_v4 = vsub.s32 0, %v2757_v2  ;;  %v2763_v5 = vsub.s32 1, %v2757_v2  ;;  %v2565_v18 = vmov 5   ;;  %v593_v19 = vld [vmem:[#allocation6 + $0x2] ss:$8 sm:$0x3] }
  0x50   : > { %v2566_v20 = vmov 6   ;;  %v2567_v23 = vmov 7   ;;  %v2569_v25 = vmov 9   ;;  %v815_v26 = vld [vmem:[#allocation6 + $0x3] ss:$8 sm:$0x3] }
  0x51   : > { %3713 = vst [vmem:[#allocation12_spill] sm:$0xff] %v2763_v5  ;;  %v376_v10 = vrot.slane %v371_v9, %v2760_v4  ;;  %v380_v11 = vrot.slane %v371_v9, %v2763_v5  ;;  %2389 = vset.pattern.permute.xlu1 %v2559_v13  ;;  %v598_v21 = vrot.slane %v593_v19, %v2760_v4  ;;  %v2570_v27 = vmov 10   ;;  %s2572_s29 = smov 16   ;;  %v1037_v33 = vld [vmem:[#allocation6 + $0x4] ss:$8 sm:$0x3] }
  0x52   : > { %317 = vperm.xlu1 %2389, %v2768_v7   ;;  %v602_v22 = vrot.slane %v593_v19, %v2763_v5  ;;  %v820_v28 = vrot.slane %v815_v26, %v2760_v4  ;;  %v824_v29 = vrot.slane %v815_v26, %v2763_v5  ;;  %v2571_v30 = vmov 11   ;;  %s2579_s7 = smov 127   ;;  %s2580_s8 = smov 126  }
  0x53   : > { %v381_v12 = vcombine.low %v376_v10, %v380_v11  ;;  %v2573_v32 = vmov 13   ;;  %v2574_v34 = vmov 14   ;;  %v1042_v35 = vrot.slane %v1037_v33, %v2760_v4  ;;  %s2581_s12 = smov 112   ;;  %s2582_s13 = smov 111  }
  0x54   : > { %v603_v24 = vcombine.low %v598_v21, %v602_v22  ;;  %v825_v31 = vcombine.low %v820_v28, %v824_v29  ;;  %v1046_v36 = vrot.slane %v1037_v33, %v2763_v5  ;;  %v2575_v37 = vmov 15   ;;  %s2584_s11 = smov 18   ;;  %s2588_s14 = smov 33  }
  0x55   : > { %382 = vrot.lane.b32.xlu0 %v381_v12, %s2560_s26  ;;  %v2576_v39 = vmov 17   ;;  %v2577_v40 = vmov 18   ;;  %v2578_v41 = vmov 19   ;;  %vm241_vm1 = vcmask 1043592   ;;  %s2590_s20 = smov 34   ;;  %s2594_s5 = smov 110  }
  0x56   : > { %2390 = vset.pattern.permute.xlu1 %v2561_v14  ;;  %v1047_v38 = vcombine.low %v1042_v35, %v1046_v36  ;;  %vm242_vm2 = vcmask 1047556   ;;  %vm237_vm3 = vcmask 138240   ;;  %vm245_vm4 = vcmask 134144   ;;  %s2595_s21 = smov 32   ;;  %s2605_s26 = smov 96  }
  0x57   : > { %343 = vperm.xlu1 %2390, %v2768_v7   ;;  %vm243_vm5 = vmor %vm242_vm2, %vm241_vm1  ;;  %vm385_vm6 = vcmask 7168   ;;  %v2808_v53 = vsub.s32 4, %v2757_v2  ;;  %v2818_v58 = vsub.s32 5, %v2757_v2  ;;  %v2828_v0 = vsub.s32 2, %v2757_v2  ;;  %p3760_p3 = scmp.ne.s32.totalorder %s3707_s10, 0 }
  0x58   : > { %v2831_v1 = vsub.s32 6, %v2757_v2  ;;  %vm607_vm7 = vcmask 15360   ;;  %vm829_vm8 = vcmask 130048   ;;  %vm880_vm9 = vcmask 916480  }
  0x59   : > { %614 = vperm.xlu0 %2395, %v2768_v7   ;;  %3714 = vst [vmem:[#allocation13_spill] sm:$0xff] %v2818_v58  ;;  %3715 = vst [vmem:[#allocation14_spill] sm:$0xff] %v2828_v0  ;;  %vm1101_vm10 = vcmask 908288   ;;  %vm1272_vm11 = vcmask 146432   ;;  %vm436_vm12 = vcmask 1039360   ;;  %vm658_vm13 = vcmask 1031168  }
  0x5a   : > { %3716 = vst [vmem:[#allocation15_spill] sm:$0xff] %v2831_v1  ;;  %vm1494_vm14 = vcmask 261120   ;;  %vm1716_vm15 = vcmask 269312   ;;  %vm1938_vm0 = vcmask 277504   ;;  %vm1323_vm1 = vcmask 900096  }
  0x5b   : > { %2391 = vset.pattern.permute.xlu1 %v2563_v16  ;;  %vm1545_vm2 = vcmask 785408  }
  0x5c   : > { %392 = vperm.xlu1 %2391, %v2768_v7  }
  0x5d   : > { %2399 = vset.pattern.permute.xlu0 %v2562_v15 }
  0x5e   : > { %836 = vperm.xlu0 %2399, %v2768_v7  }
  0x60   : > { %2392 = vset.pattern.permute.xlu1 %v2565_v18  ;;  %v2852_v18 = vsub.s32 7, %v2757_v2 }
  0x61   : > { %444 = vperm.xlu1 %2392, %v2768_v7  }
  0x62   : > { %2403 = vset.pattern.permute.xlu0 %v2564_v17  ;;  %v2849_v17 = vsub.s32 3, %v2757_v2  ;;  %3717 = vst [vmem:[#allocation16_spill] sm:$0xff] %v2852_v18 }
  0x63   : > { %1057 = vperm.xlu0 %2403, %v2768_v7  }
  0x65   : > { %2393 = vset.pattern.permute.xlu1 %v2566_v20 }
  0x66   : > { %493 = vperm.xlu1 %2393, %v2768_v7  }
  0x6a   : > { %2394 = vset.pattern.permute.xlu1 %v2567_v23 }
  0x6b   : > { %542 = vperm.xlu1 %2394, %v2768_v7  }
  0x6f   : > { %604 = vrot.lane.b32.xlu1 %v603_v24, %s2568_s28  ;;  %s2606_s28 = smov 95  }
  0x70   : > { %2396 = vset.pattern.permute.xlu1 %v2569_v25 }
  0x73   : > { %666 = vperm.xlu1 %2396, %v2768_v7  }
  0x77   : > { %2397 = vset.pattern.permute.xlu1 %v2570_v27 }
  0x78   : > { %715 = vperm.xlu1 %2397, %v2768_v7  }
  0x7c   : > { %2398 = vset.pattern.permute.xlu1 %v2571_v30 }
  0x7d   : > { %764 = vperm.xlu1 %2398, %v2768_v7  }
  0x81   : > { %826 = vrot.lane.b32.xlu1 %v825_v31, %s2572_s29  ;;  %s2607_s29 = smov 94  }
  0x82   : > { %2400 = vset.pattern.permute.xlu1 %v2573_v32 }
  0x85   : > { %888 = vperm.xlu1 %2400, %v2768_v7  }
  0x89   : > { %2401 = vset.pattern.permute.xlu1 %v2574_v34 }
  0x8a   : > { %937 = vperm.xlu1 %2401, %v2768_v7  }
  0x8e   : > { %2402 = vset.pattern.permute.xlu1 %v2575_v37 }
  0x8f   : > { %986 = vperm.xlu1 %2402, %v2768_v7  }
  0x93   : > { %1048 = vrot.lane.b32.xlu1 %v1047_v38, %s2558_s24  ;;  %s2608_s24 = smov [#allocation8]  }
  0x94   : > { %2404 = vset.pattern.permute.xlu1 %v2576_v39 }
  0x97   : > { %1109 = vperm.xlu1 %2404, %v2768_v7  }
  0x9b   : > { %2405 = vset.pattern.permute.xlu1 %v2577_v40 }
  0x9c   : > { %1158 = vperm.xlu1 %2405, %v2768_v7  }
  0xa0   : > { %2406 = vset.pattern.permute.xlu1 %v2578_v41 }
  0xc0   : > { %v235_v42 = vpop.permute.xlu0 %234 }
  0xc1   : > { %v236_v43 = vrot.slane %v235_v42, 4 }
  0xc3   : > { %v238_v44 = vsel %vm237_vm3, %v236_v43, %v235_v42  ;;  %246 = vst.msk [vmem:[#allocation2 + $0x8] sm:$0xf] %vm245_vm4, %v236_v43  ;;  %vm1989_vm4 = vcmask 769024  }
  0xc4   : > { %244 = vst.msk [vmem:[#allocation2] sm:$0xff] %vm243_vm5, %v238_v44 }
  0xc7   : > { %v383_v45 = vpop.permute.xlu0 %382 }
  0xc8   : > { %v384_v46 = vrot.slane %v383_v45, 4  ;;  %v2800_v47 = vpop.permute.xlu1 %291 }
  0xca   : > { %v369_v48 = vld [vmem:[#allocation2 + $0x8] sm:$0xf]  ;;  %v386_v49 = vsel %vm385_vm6, %v384_v46, %v383_v45 }
  0xcb   : > { %v2802_v50 = vld [vmem:[#allocation2] sm:$0xff]  ;;  %v390_v52 = vmul.f32 %v384_v46, %v369_v48  ;;  %v591_v30 = vld [vmem:[#allocation2 + $0x8] sm:$0xf] }
  0xcc   : > { %v2805_v51 = vmul.f32 %v386_v49, %v2802_v50 }
  0xcd   : > { %v2810_v54 = vpop.permute.xlu1 %317  ;;  %v408_v55 = vrot.slane %v390_v52, %v2760_v4  ;;  %v458_v61 = vrot.slane %v390_v52, %v2763_v5  ;;  %v507_v10 = vrot.slane %v390_v52, %v2828_v0  ;;  %v556_v20 = vrot.slane %v390_v52, %v2849_v17 }
  0xce   : > { %v404_v56 = vrot.slane %v2805_v51, %v2808_v53  ;;  %v454_v62 = vrot.slane %v2805_v51, %v2818_v58  ;;  %v503_v11 = vrot.slane %v2805_v51, %v2831_v1  ;;  %v552_v21 = vrot.slane %v2805_v51, %v2852_v18 }
  0xcf   : > { %v423_v59 = vrot.slane %v408_v55, %v2760_v4  ;;  %v473_v8 = vrot.slane %v458_v61, %v2763_v5  ;;  %v522_v15 = vrot.slane %v507_v10, %v2828_v0  ;;  %v571_v2 = vrot.slane %v556_v20, %v2849_v17 }
  0xd0   : > { %v419_v60 = vrot.slane %v404_v56, %v2760_v4  ;;  %v469_v9 = vrot.slane %v454_v62, %v2763_v5  ;;  %v518_v16 = vrot.slane %v503_v11, %v2828_v0  ;;  %v567_v24 = vrot.slane %v552_v21, %v2849_v17 }
  0xd2   : > { %v2815_v57 = vpop.permute.xlu1 %343 }
  0xd4   : > { %v615_v37 = vpop.permute.xlu0 %614 }
  0xd7   : > { %v2825_v63 = vpop.permute.xlu1 %392 }
  0xd8   : > { %v426_v3 = vmul.f32 %v423_v59, %v2825_v63  ;;  %v425_v6 = vmul.f32 %v419_v60, %v2825_v63 }
  0xda   : > { %434 = vrot.lane.b32.xlu0 %v426_v3, %s2579_s7  ;;  %432 = vrot.lane.b32.xlu1 %v425_v6, %s2579_s7 }
  0xdc   : > { %v2842_v12 = vpop.permute.xlu1 %444 }
  0xdd   : > { %v476_v13 = vmul.f32 %v473_v8, %v2842_v12  ;;  %v475_v14 = vmul.f32 %v469_v9, %v2842_v12 }
  0xdf   : > { %484 = vrot.lane.b32.xlu0 %v476_v13, %s2579_s7  ;;  %482 = vrot.lane.b32.xlu1 %v475_v14, %s2579_s7  ;;  %v813_v13 = vld [vmem:[#allocation2 + $0x8] sm:$0xf] }
  0xe1   : > { %v2856_v19 = vpop.permute.xlu1 %493 }
  0xe2   : > { %v525_v22 = vmul.f32 %v522_v15, %v2856_v19  ;;  %v524_v23 = vmul.f32 %v518_v16, %v2856_v19 }
  0xe4   : > { %533 = vrot.lane.b32.xlu0 %v525_v22, %s2579_s7  ;;  %531 = vrot.lane.b32.xlu1 %v524_v23, %s2579_s7 }
  0xe6   : > { %v2867_v25 = vpop.permute.xlu1 %542 }
  0xe7   : > { %v574_v26 = vmul.f32 %v571_v2, %v2867_v25  ;;  %v573_v27 = vmul.f32 %v567_v24, %v2867_v25 }
  0xe9   : > { %582 = vrot.lane.b32.xlu0 %v574_v26, %s2579_s7  ;;  %580 = vrot.lane.b32.xlu1 %v573_v27, %s2579_s7  ;;  %v837_v26 = vpop.permute.xlu0 %836 }
  0xea   : > { %v605_v28 = vpop.permute.xlu1 %604 }
  0xeb   : > { %v606_v29 = vrot.slane %v605_v28, 4 }
  0xed   : > { %v608_v31 = vsel %vm607_vm7, %v606_v29, %v605_v28  ;;  %v612_v32 = vmul.f32 %v606_v29, %v591_v30 }
  0xee   : > { %v2874_v33 = vmul.f32 %v608_v31, %v2802_v50  ;;  %v2876_v34 = vpop.permute.xlu1 %666 }
  0xef   : > { %v630_v35 = vrot.slane %v612_v32, %v2760_v4  ;;  %v680_v36 = vrot.slane %v612_v32, %v2763_v5  ;;  %v729_v45 = vrot.slane %v612_v32, %v2828_v0  ;;  %v778_v62 = vrot.slane %v612_v32, %v2849_v17 }
  0xf0   : > { %v622_v38 = vrot.slane %v2874_v33, %v2760_v4  ;;  %v626_v39 = vrot.slane %v2874_v33, %v2808_v53  ;;  %v676_v49 = vrot.slane %v2874_v33, %v2818_v58  ;;  %v725_v61 = vrot.slane %v2874_v33, %v2831_v1 }
  0xf1   : > { %v645_v40 = vrot.slane %v630_v35, %v2760_v4  ;;  %v695_v44 = vrot.slane %v680_v36, %v2763_v5  ;;  %v744_v55 = vrot.slane %v729_v45, %v2828_v0  ;;  %v793_v11 = vrot.slane %v778_v62, %v2849_v17  ;;  %v1035_v62 = vld [vmem:[#allocation2 + $0x8] sm:$0xf] }
  0xf2   : > { %v637_v41 = vrot.slane %v622_v38, %v2760_v4  ;;  %v641_v48 = vrot.slane %v626_v39, %v2760_v4  ;;  %v691_v60 = vrot.slane %v676_v49, %v2763_v5  ;;  %v740_v9 = vrot.slane %v725_v61, %v2828_v0 }
  0xf3   : > { %v2886_v42 = vpop.permute.xlu1 %715  ;;  %v648_v43 = vmul.f32 %v645_v40, %v615_v37  ;;  %v698_v52 = vmul.f32 %v695_v44, %v2876_v34  ;;  %v774_v14 = vrot.slane %v2874_v33, %v2852_v18 }
  0xf4   : > { %v646_v46 = vmul.f32 %v637_v41, %v615_v37  ;;  %v647_v59 = vmul.f32 %v641_v48, %v615_v37  ;;  %v747_v3 = vmul.f32 %v744_v55, %v2886_v42  ;;  %v697_v8 = vmul.f32 %v691_v60, %v2876_v34 }
  0xf5   : > { %656 = vrot.lane.b32.xlu0 %v648_v43, %s2580_s8  ;;  %v746_v23 = vmul.f32 %v740_v9, %v2886_v42  ;;  %v789_v27 = vrot.slane %v774_v14, %v2849_v17 }
  0xf6   : > { %652 = vrot.lane.b32.xlu1 %v646_v46, %s2580_s8 }
  0xf8   : > { %v2897_v56 = vpop.permute.xlu1 %764 }
  0xf9   : > { %706 = vrot.lane.b32.xlu0 %v698_v52, %s2580_s8  ;;  %v796_v20 = vmul.f32 %v793_v11, %v2897_v56  ;;  %v795_v30 = vmul.f32 %v789_v27, %v2897_v56 }
  0xfa   : > { %654 = vrot.lane.b32.xlu1 %v647_v59, %s2580_s8 }
  0xfc   : > { %v827_v6 = vpop.permute.xlu1 %826 }
  0xfd   : > { %v828_v10 = vrot.slane %v827_v6, 4  ;;  %755 = vrot.lane.b32.xlu0 %v747_v3, %s2580_s8 }
  0xfe   : > { %704 = vrot.lane.b32.xlu1 %v697_v8, %s2580_s8 }
  0xff   : > { %v830_v15 = vsel %vm829_vm8, %v828_v10, %v827_v6  ;;  %v834_v16 = vmul.f32 %v828_v10, %v813_v13 }
 0x100   : > { %v2915_v21 = vmul.f32 %v830_v15, %v2802_v50  ;;  %v2917_v22 = vpop.permute.xlu1 %888 }
 0x101   : > { %804 = vrot.lane.b32.xlu0 %v796_v20, %s2580_s8  ;;  %v852_v2 = vrot.slane %v834_v16, %v2760_v4  ;;  %v902_v24 = vrot.slane %v834_v16, %v2763_v5  ;;  %v951_v38 = vrot.slane %v834_v16, %v2828_v0  ;;  %v1000_v46 = vrot.slane %v834_v16, %v2849_v17  ;;  %v1058_v20 = vpop.permute.xlu0 %1057 }
 0x102   : > { %753 = vrot.lane.b32.xlu1 %v746_v23, %s2580_s8  ;;  %v844_v28 = vrot.slane %v2915_v21, %v2760_v4  ;;  %v848_v32 = vrot.slane %v2915_v21, %v2808_v53  ;;  %v898_v41 = vrot.slane %v2915_v21, %v2818_v58  ;;  %v947_v52 = vrot.slane %v2915_v21, %v2831_v1 }
 0x103   : > { %v867_v29 = vrot.slane %v852_v2, %v2760_v4  ;;  %v917_v37 = vrot.slane %v902_v24, %v2763_v5  ;;  %v966_v44 = vrot.slane %v951_v38, %v2828_v0  ;;  %v1015_v61 = vrot.slane %v1000_v46, %v2849_v17 }
 0x104   : > { %v859_v31 = vrot.slane %v844_v28, %v2760_v4  ;;  %v863_v40 = vrot.slane %v848_v32, %v2760_v4  ;;  %v913_v49 = vrot.slane %v898_v41, %v2763_v5  ;;  %v962_v6 = vrot.slane %v947_v52, %v2828_v0 }
 0x105   : > { %v2932_v35 = vpop.permute.xlu1 %937  ;;  %v870_v36 = vmul.f32 %v867_v29, %v837_v26  ;;  %v920_v43 = vmul.f32 %v917_v37, %v2917_v22  ;;  %v996_v13 = vrot.slane %v2915_v21, %v2852_v18  ;;  %v400_v38 = vrot.slane %v2805_v51, %v2760_v4 }
 0x106   : > { %802 = vrot.lane.b32.xlu1 %v795_v30, %s2580_s8  ;;  %v868_v39 = vmul.f32 %v859_v31, %v837_v26  ;;  %v869_v48 = vmul.f32 %v863_v40, %v837_v26  ;;  %v969_v55 = vmul.f32 %v966_v44, %v2932_v35  ;;  %v919_v3 = vmul.f32 %v913_v49, %v2917_v22 }
 0x107   : > { %878 = vrot.lane.b32.xlu0 %v870_v36, %s2581_s12  ;;  %v968_v16 = vmul.f32 %v962_v6, %v2932_v35  ;;  %v1011_v26 = vrot.slane %v996_v13, %v2849_v17  ;;  %v415_v46 = vrot.slane %v400_v38, %v2760_v4 }
 0x10a   : > { %v2943_v45 = vpop.permute.xlu1 %986  ;;  %874 = vrot.lane.b32.xlu1 %v868_v39, %s2581_s12 }
 0x10b   : > { %928 = vrot.lane.b32.xlu0 %v920_v43, %s2581_s12  ;;  %v1018_v10 = vmul.f32 %v1015_v61, %v2943_v45  ;;  %v1017_v30 = vmul.f32 %v1011_v26, %v2943_v45  ;;  %v499_v61 = vrot.slane %v2805_v51, %v2828_v0  ;;  %v894_v26 = vrot.slane %v2915_v21, %v2763_v5 }
 0x10e   : > { %v1049_v59 = vpop.permute.xlu1 %1048  ;;  %876 = vrot.lane.b32.xlu1 %v869_v48, %s2581_s12  ;;  %v450_v48 = vrot.slane %v2805_v51, %v2763_v5 }
 0x10f   : > { %v1050_v60 = vrot.slane %v1049_v59, 4  ;;  %977 = vrot.lane.b32.xlu0 %v969_v55, %s2581_s12 }
 0x111   : > { %v1051_v8 = vsel %vm237_vm3, %v1050_v60, %v1049_v59  ;;  %v2958_v9 = vmul.f32 %v1050_v60, %v1035_v62  ;;  %v424_v59 = vmul.f32 %v415_v46, %v2825_v63  ;;  %v465_v60 = vrot.slane %v450_v48, %v2763_v5 }
 0x112   : > { %v2962_v11 = vmul.f32 %v1051_v8, %v2802_v50  ;;  %926 = vrot.lane.b32.xlu1 %v919_v3, %s2581_s12  ;;  %v2976_v24 = vpop.permute.xlu1 %1109  ;;  %v514_v8 = vrot.slane %v499_v61, %v2828_v0  ;;  %v548_v63 = vrot.slane %v2805_v51, %v2849_v17  ;;  %v721_v51 = vrot.slane %v2874_v33, %v2828_v0 }
 0x113   : > { %1026 = vrot.lane.b32.xlu0 %v1018_v10, %s2581_s12  ;;  %v1073_v14 = vrot.slane %v2958_v9, %v2760_v4  ;;  %v1123_v15 = vrot.slane %v2958_v9, %v2763_v5  ;;  %v1172_v29 = vrot.slane %v2958_v9, %v2828_v0  ;;  %v474_v6 = vmul.f32 %v465_v60, %v2842_v12 }
 0x114   : > { %v1065_v23 = vrot.slane %v2962_v11, %v2760_v4  ;;  %v1069_v32 = vrot.slane %v2962_v11, %v2808_v53  ;;  %v1119_v43 = vrot.slane %v2962_v11, %v2818_v58  ;;  %v1168_v55 = vrot.slane %v2962_v11, %v2831_v1 }
 0x115   : > { %v1088_v2 = vrot.slane %v1073_v14, %v2760_v4  ;;  %v1138_v28 = vrot.slane %v1123_v15, %v2763_v5  ;;  %v1187_v37 = vrot.slane %v1172_v29, %v2828_v0  ;;  %v523_v13 = vmul.f32 %v514_v8, %v2856_v19 }
 0x116   : > { %975 = vrot.lane.b32.xlu1 %v968_v16, %s2581_s12  ;;  %v1080_v31 = vrot.slane %v1065_v23, %v2760_v4  ;;  %v1084_v41 = vrot.slane %v1069_v32, %v2760_v4  ;;  %v1134_v52 = vrot.slane %v1119_v43, %v2763_v5  ;;  %v1183_v3 = vrot.slane %v1168_v55, %v2828_v0 }
 0x117   : > { %v1091_v27 = vmul.f32 %v1088_v2, %v1058_v20  ;;  %v1141_v36 = vmul.f32 %v1138_v28, %v2976_v24  ;;  %v2993_v39 = vpop.permute.xlu1 %1158  ;;  %v672_v14 = vrot.slane %v2874_v33, %v2763_v5  ;;  %v563_v12 = vrot.slane %v548_v63, %v2849_v17 }
 0x118   : > { %v1089_v40 = vmul.f32 %v1080_v31, %v1058_v20  ;;  %v1190_v44 = vmul.f32 %v1187_v37, %v2993_v39  ;;  %v1090_v49 = vmul.f32 %v1084_v41, %v1058_v20  ;;  %v1140_v62 = vmul.f32 %v1134_v52, %v2976_v24 }
 0x119   : > { %1099 = vrot.lane.b32.xlu0 %v1091_v27, %s2582_s13  ;;  %v1189_v10 = vmul.f32 %v1183_v3, %v2993_v39  ;;  %v572_v15 = vmul.f32 %v563_v12, %v2867_v25  ;;  %v687_v16 = vrot.slane %v672_v14, %v2763_v5  ;;  %v2583_v20 = vmov 20  }
 0x11a   : > { %1024 = vrot.lane.b32.xlu1 %v1017_v30, %s2581_s12  ;;  %2407 = vset.pattern.permute.xlu0 %v2583_v20  ;;  %v736_v23 = vrot.slane %v721_v51, %v2828_v0  ;;  %v770_v2 = vrot.slane %v2874_v33, %v2849_v17  ;;  %v943_v29 = vrot.slane %v2915_v21, %v2828_v0  ;;  %vm1767_vm3 = vcmask 777216  }
 0x11b   : > { %v696_v19 = vmul.f32 %v687_v16, %v2876_v34  ;;  %v909_v34 = vrot.slane %v894_v26, %v2763_v5  ;;  %v992_v30 = vrot.slane %v2915_v21, %v2849_v17  ;;  %v1164_v37 = vrot.slane %v2962_v11, %v2828_v0 }
 0x11c   : > { %v745_v25 = vmul.f32 %v736_v23, %v2886_v42  ;;  %v785_v27 = vrot.slane %v770_v2, %v2849_v17  ;;  %v958_v42 = vrot.slane %v943_v29, %v2828_v0 }
 0x11d   : > { %1149 = vrot.lane.b32.xlu0 %v1141_v36, %s2582_s13  ;;  %v918_v33 = vmul.f32 %v909_v34, %v2917_v22  ;;  %v1007_v32 = vrot.slane %v992_v30, %v2849_v17 }
 0x11e   : > { %1095 = vrot.lane.b32.xlu1 %v1089_v40, %s2582_s13  ;;  %v794_v28 = vmul.f32 %v785_v27, %v2897_v56  ;;  %v967_v31 = vmul.f32 %v958_v42, %v2932_v35  ;;  %v1115_v56 = vrot.slane %v2962_v11, %v2763_v5  ;;  %v1179_v35 = vrot.slane %v1164_v37, %v2828_v0 }
 0x11f   : > { %v1016_v36 = vmul.f32 %v1007_v32, %v2943_v45  ;;  %v1213_v32 = vrot.slane %v2962_v11, %v2849_v17 }
 0x120   : > { %v1130_v22 = vrot.slane %v1115_v56, %v2763_v5  ;;  %v1188_v38 = vmul.f32 %v1179_v35, %v2993_v39 }
 0x121   : > { %1198 = vrot.lane.b32.xlu0 %v1190_v44, %s2582_s13  ;;  %v1228_v35 = vrot.slane %v1213_v32, %v2849_v17 }
 0x122   : > { %1097 = vrot.lane.b32.xlu1 %v1090_v49, %s2582_s13  ;;  %v1139_v21 = vmul.f32 %v1130_v22, %v2976_v24  ;;  %v1258_v22 = vld [vmem:[#allocation6 + $0x5] ss:$8 sm:$0x3] }
 0x125   : > { %430 = vrot.lane.b32.xlu0 %v424_v59, %s2579_s7 }
 0x126   : > { %1147 = vrot.lane.b32.xlu1 %v1140_v62, %s2582_s13 }
 0x129   : > { %480 = vrot.lane.b32.xlu0 %v474_v6, %s2579_s7 }
 0x12a   : > { %1196 = vrot.lane.b32.xlu1 %v1189_v10, %s2582_s13 }
 0x12d   : > { %529 = vrot.lane.b32.xlu0 %v523_v13, %s2579_s7 }
 0x12e   : > { %1207 = vperm.xlu1 %2406, %v2768_v7  }
 0x131   : > { %578 = vrot.lane.b32.xlu0 %v572_v15, %s2579_s7 }
 0x135   : > { %702 = vrot.lane.b32.xlu0 %v696_v19, %s2580_s8 }
 0x139   : > { %751 = vrot.lane.b32.xlu0 %v745_v25, %s2580_s8 }
 0x13d   : > { %800 = vrot.lane.b32.xlu0 %v794_v28, %s2580_s8 }
 0x141   : > { %924 = vrot.lane.b32.xlu0 %v918_v33, %s2581_s12 }
 0x145   : > { %973 = vrot.lane.b32.xlu0 %v967_v31, %s2581_s12 }
 0x149   : > { %1022 = vrot.lane.b32.xlu0 %v1016_v36, %s2581_s12  ;;  %v1217_v36 = vrot.slane %v2962_v11, %v2852_v18  ;;  %s2275_s12 = sshll.u32 %s2655_s19, 7  ;;  %s2485_s19 = sshll.u32 %s2608_s24, 4  ;;  %s2486_s19 = int_to_ptr.vmem [resolvable:$false] %s2485_s19 }
 0x14c   : > { %v3069_v40 = vpop.permute.xlu0 %434  ;;  %v3072_v45 = vpop.permute.xlu1 %432 }
 0x14d   : > { %1145 = vrot.lane.b32.xlu0 %v1139_v21, %s2582_s13  ;;  %v1221_v21 = vrot.slane %v2958_v9, %v2849_v17 }
 0x14f   : > { %v1236_v11 = vrot.slane %v1221_v21, %v2849_v17  ;;  %v2585_v21 = vmov 21  }
 0x150   : > { %2408 = vset.pattern.permute.xlu1 %v2585_v21  ;;  %v1924_v21 = vld [vmem:[#allocation6 + $0x10] ss:$8 sm:$0x3] }
 0x151   : > { %1194 = vrot.lane.b32.xlu0 %v1188_v38, %s2582_s13  ;;  %v3074_v41 = vpop.permute.xlu0 %484  ;;  %v3076_v43 = vpop.permute.xlu1 %482  ;;  %v1232_v38 = vrot.slane %v1217_v36, %v2849_v17 }
 0x156   : > { %v3078_v44 = vpop.permute.xlu0 %533  ;;  %v3080_v46 = vpop.permute.xlu1 %531 }
 0x15b   : > { %v3082_v24 = vpop.permute.xlu0 %582  ;;  %v3084_v48 = vpop.permute.xlu1 %580 }
 0x167   : > { %v3086_v49 = vpop.permute.xlu0 %656 }
 0x168   : > { %v3088_v39 = vpop.permute.xlu1 %652 }
 0x16b   : > { %v3090_v52 = vpop.permute.xlu0 %706 }
 0x16c   : > { %v3092_v55 = vpop.permute.xlu1 %654 }
 0x16f   : > { %v3094_v59 = vpop.permute.xlu0 %755 }
 0x170   : > { %v3096_v60 = vpop.permute.xlu1 %704 }
 0x173   : > { %v3100_v62 = vpop.permute.xlu0 %804 }
 0x174   : > { %v3098_v61 = vpop.permute.xlu1 %753 }
 0x178   : > { %v3102_v3 = vpop.permute.xlu1 %802 }
 0x179   : > { %v3104_v6 = vpop.permute.xlu0 %878 }
 0x17c   : > { %v875_v8 = vpop.permute.xlu1 %874 }
 0x17d   : > { %v3106_v10 = vpop.permute.xlu0 %928 }
 0x180   : > { %v3108_v63 = vpop.permute.xlu1 %876 }
 0x181   : > { %v3112_v13 = vsel %vm880_vm9, %v875_v8, %v3108_v63  ;;  %v3114_v14 = vpop.permute.xlu0 %977  ;;  %v1263_v8 = vrot.slane %v1258_v22, %v2760_v4 }
 0x184   : > { %v3116_v12 = vpop.permute.xlu1 %926 }
 0x185   : > { %v3118_v15 = vpop.permute.xlu0 %1026 }
 0x188   : > { %v3120_v16 = vpop.permute.xlu1 %975 }
 0x18b   : > { %v1100_v51 = vpop.permute.xlu0 %1099 }
 0x18c   : > { %v3122_v20 = vpop.permute.xlu1 %1024 }
 0x18d   : > { %3718 = vst [vmem:[#allocation17_spill] sm:$0xff] %v3122_v20 }
 0x18f   : > { %v1150_v19 = vpop.permute.xlu0 %1149 }
 0x190   : > { %v1096_v23 = vpop.permute.xlu1 %1095 }
 0x193   : > { %v1199_v2 = vpop.permute.xlu0 %1198 }
 0x194   : > { %v1098_v25 = vpop.permute.xlu1 %1097 }
 0x195   : > { %v3125_v26 = vsel %vm1101_vm10, %v1096_v23, %v1098_v25  ;;  %v3128_v27 = vsel %vm1101_vm10, %v1098_v25, %v1100_v51  ;;  %v1267_v51 = vrot.slane %v1258_v22, %v2763_v5 }
 0x196   : > { %3719 = vst [vmem:[#allocation18_spill] sm:$0xff] %v3125_v26  ;;  %3720 = vst [vmem:[#allocation19_spill] sm:$0xff] %v3128_v27 }
 0x197   : > { %v3130_v28 = vpop.permute.xlu0 %430  ;;  %v1268_v9 = vcombine.low %v1263_v8, %v1267_v51  ;;  %v2586_v51 = vmov 22  }
 0x198   : > { %v1148_v34 = vpop.permute.xlu1 %1147 }
 0x199   : > { %v3133_v29 = vsel %vm1101_vm10, %v1148_v34, %v1150_v19 }
 0x19a   : > { %3721 = vst [vmem:[#allocation20_spill] sm:$0xff] %v3133_v29 }
 0x19b   : > { %v3135_v33 = vpop.permute.xlu0 %480 }
 0x19c   : > { %v3137_v42 = vpop.permute.xlu1 %1196 }
 0x19d   : > { %3722 = vst [vmem:[#allocation21_spill] sm:$0xff] %v3137_v42  ;;  %v3141_v30 = vsel %vm1101_vm10, %v3137_v42, %v1199_v2  ;;  %v2589_v42 = vmov 28  }
 0x19e   : > { %3723 = vst [vmem:[#allocation22_spill] sm:$0xff] %v3141_v30 }
 0x19f   : > { %v3143_v31 = vpop.permute.xlu0 %529 }
 0x1a3   : > { %v3145_v56 = vpop.permute.xlu0 %578 }
 0x1a7   : > { %v3151_v37 = vpop.permute.xlu0 %702 }
 0x1a9   : > { %v1208_v19 = vpop.permute.xlu1 %1207 }
 0x1aa   : > { %v1237_v23 = vmul.f32 %v1228_v35, %v1208_v19  ;;  %v1238_v2 = vmul.f32 %v1232_v38, %v1208_v19  ;;  %v1239_v30 = vmul.f32 %v1236_v11, %v1208_v19  ;;  %v1702_v38 = vld [vmem:[#allocation6 + $0x7] ss:$8 sm:$0x3]  ;;  %v2587_v11 = vmov 24  }
 0x1ab   : > { %v3159_v25 = vpop.permute.xlu0 %751  ;;  %v1711_v19 = vrot.slane %v1702_v38, %v2763_v5 }
 0x1ac   : > { %1245 = vrot.lane.b32.xlu1 %v1238_v2, %s2582_s13  ;;  %1243 = vrot.lane.b32.xlu0 %v1237_v23, %s2582_s13 }
 0x1af   : > { %v3164_v32 = vpop.permute.xlu0 %800 }
 0x1b0   : > { %1269 = vrot.lane.b32.xlu1 %v1268_v9, %s2584_s11  ;;  %1247 = vrot.lane.b32.xlu0 %v1239_v30, %s2582_s13  ;;  %v1707_v30 = vrot.slane %v1702_v38, %v2760_v4  ;;  %v1933_v38 = vrot.slane %v1924_v21, %v2763_v5  ;;  %s228_s13 = scalar_lea.vmem [#allocation8], %s2266_s30  ;;  %s2487_s30 = scalar_lea.vmem %s2486_s19, 256 }
 0x1b1   : > { %s2178_s11 = sshll.u32 %s228_s13, 4  ;;  %s2179_s11 = int_to_ptr.vmem [resolvable:$true] %s2178_s11 }
 0x1b2   : > { %v1712_v9 = vcombine.low %v1707_v30, %v1711_v19  ;;  %v2592_v30 = vmov 35   ;;  %s2481_s23 = scalar_lea.vmem %s2179_s11, 128  ;;  %p2488_p10 = scmp.lt.s32.totalorder %s2179_s11, %s2486_s19 }
 0x1b3   : > { %v925_v36 = vpop.permute.xlu0 %924  ;;  %p2482_p8 = scmp.ne.s32.totalorder %s2179_s11, %s2481_s23  ;;  %p2489_p2 = scmp.lt.s32.totalorder %s2487_s30, %s2481_s23 }
 0x1b4   : > { %v3169_v22 = vsel %vm880_vm9, %v925_v36, %v3116_v12  ;;  %1279 = vperm.xlu0 %2407, %v2768_v7  }
 0x1b5   : > { %p2483_p11 = pnand %p2482_p8, %p3760_p3  ;;  %p2490_p13 = por %p2489_p2, %p2488_p10 }
 0x1b7   : > { %v974_v35 = vpop.permute.xlu0 %973  ;;  %p2484_p7 = pneg %p2483_p11 }
 0x1b8   : > { %v3174_v8 = vsel %vm880_vm9, %v974_v35, %v3120_v16  ;;  %2409 = vset.pattern.permute.xlu0 %v2586_v51  ;;  %v1929_v51 = vrot.slane %v1924_v21, %v2760_v4 }
 0x1b9   : > { %1380 = vperm.xlu0 %2409, %v2768_v7   ;;  %p2491_p0 = pnand %p2490_p13, %p2484_p7 }
 0x1bb   : > { %v1023_v23 = vpop.permute.xlu0 %1022 }
 0x1bc   : > { %v3181_v2 = vsel %vm880_vm9, %v1023_v23, %v3122_v20  ;;  %v1934_v23 = vcombine.low %v1929_v51, %v1933_v38 }
 0x1bd   : > { %3724 = vst [vmem:[#allocation23_spill] sm:$0xff] %v3181_v2  ;;  %2411 = vset.pattern.permute.xlu0 %v2587_v11  ;;  %v2591_v11 = vmov 32  }
 0x1be   : > { %1501 = vperm.xlu0 %2411, %v2768_v7  }
 0x1bf   : > { %v1146_v36 = vpop.permute.xlu0 %1145 }
 0x1c0   : > { %v3185_v35 = vsel %vm1101_vm10, %v1146_v36, %v1148_v34  ;;  %v2593_v34 = vmov 0  }
 0x1c1   : > { %3725 = vst [vmem:[#allocation24_spill] sm:$0xff] %v3185_v35  ;;  %v249_v35 = vld [vmem:[#allocation6] ss:$8 sm:$0x3] }
 0x1c2   : > { %1713 = vrot.lane.b32.xlu0 %v1712_v9, %s2588_s14 }
 0x1c3   : > { %2415 = vset.pattern.permute.xlu0 %v2589_v42  ;;  %v3193_v19 = vpop.permute.xlu0 %1194 }
 0x1c4   : > { %3726 = vst [vmem:[#allocation25_spill] sm:$0xff] %v3193_v19  ;;  %v1480_v19 = vld [vmem:[#allocation6 + $0x6] ss:$8 sm:$0x3] }
 0x1c6   : > { %1723 = vperm.xlu0 %2415, %v2768_v7  }
 0x1ca   : > { %1935 = vrot.lane.b32.xlu0 %v1934_v23, %s2590_s20 }
 0x1cb   : > { %2419 = vset.pattern.permute.xlu0 %v2591_v11 }
 0x1ce   : > { %1945 = vperm.xlu0 %2419, %v2768_v7  }
 0x1d2   : > { %2422 = vset.pattern.permute.xlu0 %v2592_v30 }
 0x1d3   : > { %2095 = vperm.xlu0 %2422, %v2768_v7  }
 0x1d7   : > { %2423 = vset.pattern.permute.xlu0 %v2593_v34 }
 0x1d8   : > { %264 = vperm.xlu0 %2423, %v2768_v7  }
 0x21e   : > { %v1246_v42 = vpop.permute.xlu1 %1245  ;;  %v1244_v9 = vpop.permute.xlu0 %1243 }
 0x21f   : > { %v3196_v36 = vsel %vm1101_vm10, %v1244_v9, %v1246_v42 }
 0x220   : > { %3727 = vst [vmem:[#allocation26_spill] sm:$0xff] %v3196_v36 }
 0x222   : > { %v3198_v21 = vpop.permute.xlu1 %1269  ;;  %v1248_v51 = vpop.permute.xlu0 %1247 }
 0x223   : > { %v3683_v38 = vrot.slane %v3198_v21, 4  ;;  %v3202_v23 = vsel %vm1101_vm10, %v1246_v42, %v1248_v51  ;;  %v1485_v42 = vrot.slane %v1480_v19, %v2760_v4  ;;  %v1489_v51 = vrot.slane %v1480_v19, %v2763_v5 }
 0x224   : > { %3728 = vst [vmem:[#allocation27_spill] sm:$0xff] %v3202_v23  ;;  %v258_v19 = vrot.slane %v249_v35, %v2763_v5 }
 0x225   : > { %v1273_v11 = vsel %vm1272_vm11, %v3683_v38, %v3198_v21 }
 0x226   : > { %v3208_v30 = vmul.f32 %v1273_v11, %v2802_v50  ;;  %v1490_v11 = vcombine.low %v1485_v42, %v1489_v51 }
 0x228   : > { %v1287_v34 = vrot.slane %v3208_v30, %v2760_v4 }
 0x22a   : > { %v1302_v9 = vrot.slane %v1287_v34, %v2760_v4  ;;  %v2596_v34 = vmov 23  }
 0x22f   : > { %v3213_v36 = vpop.permute.xlu0 %1279 }
 0x230   : > { %v1311_v29 = vmul.f32 %v1302_v9, %v3213_v36 }
 0x232   : > { %1317 = vrot.lane.b32.xlu1 %v1311_v29, %s2594_s5  ;;  %v254_v29 = vrot.slane %v249_v35, %v2760_v4 }
 0x234   : > { %v3219_v38 = vpop.permute.xlu0 %1380  ;;  %v259_v42 = vcombine.low %v254_v29, %v258_v19 }
 0x235   : > { %3729 = vst [vmem:[#allocation28_spill] sm:$0xff] %v3219_v38  ;;  %v2597_v38 = vmov 25  }
 0x236   : > { %1331 = vperm.xlu1 %2408, %v2768_v7  }
 0x239   : > { %v3222_v23 = vpop.permute.xlu0 %1501 }
 0x23a   : > { %3730 = vst [vmem:[#allocation29_spill] sm:$0xff] %v3222_v23  ;;  %1491 = vrot.lane.b32.xlu1 %v1490_v11, %s2595_s21  ;;  %v2598_v11 = vmov 26   ;;  %s2164_s21 = scalar_lea.sflag [#allocation5], %s2741_s25 }
 0x23b   : > { %2410 = vset.pattern.permute.xlu1 %v2596_v34  ;;  %v261_v34 = vmul.f32 %v259_v42, %v2802_v50 }
 0x23d   : > { %v3224_v9 = vpop.permute.xlu0 %1713  ;;  %v297_v23 = vrot.slane %v261_v34, %v2763_v5  ;;  %v301_v35 = vrot.slane %v261_v34, %v2818_v58  ;;  %v327_v29 = vrot.slane %v261_v34, %v2831_v1  ;;  %v271_v50 = vrot.slane %v261_v34, %v2760_v4 }
 0x23e   : > { %3731 = vst [vmem:[#allocation30_spill] sm:$0xff] %v3224_v9  ;;  %1429 = vperm.xlu1 %2410, %v2768_v7   ;;  %v275_v42 = vrot.slane %v261_v34, %v2808_v53  ;;  %v2600_v58 = vmov 29  }
 0x23f   : > { %v337_v1 = vrot.slane %v327_v29, %v2828_v0 }
 0x240   : > { %v285_v2 = vrot.slane %v275_v42, %v2760_v4 }
 0x241   : > { %v3229_v27 = vpop.permute.xlu0 %1723  ;;  %v339_v29 = vmul.f32 %v337_v1, %v2810_v54  ;;  %v2602_v1 = vmov 31  }
 0x242   : > { %3732 = vst [vmem:[#allocation31_spill] sm:$0xff] %v3229_v27  ;;  %2412 = vset.pattern.permute.xlu1 %v2597_v38  ;;  %v2599_v27 = vmov 27   ;;  %v323_v38 = vrot.slane %v261_v34, %v2828_v0 }
 0x243   : > { %1553 = vperm.xlu1 %2412, %v2768_v7  }
 0x244   : > { %v333_v26 = vrot.slane %v323_v38, %v2828_v0 }
 0x245   : > { %v3232_v51 = vpop.permute.xlu0 %1935 }
 0x246   : > { %3733 = vst [vmem:[#allocation32_spill] sm:$0xff] %v3232_v51  ;;  %v307_v51 = vrot.slane %v297_v23, %v2763_v5  ;;  %v338_v38 = vmul.f32 %v333_v26, %v2810_v54  ;;  %v437_v54 = vsel %vm436_vm12, %v3130_v28, %v3072_v45 }
 0x247   : > { %2413 = vset.pattern.permute.xlu1 %v2598_v11  ;;  %v349_v11 = vrot.slane %v261_v34, %v2849_v17 }
 0x248   : > { %1602 = vperm.xlu1 %2413, %v2768_v7   ;;  %v312_v23 = vmul.f32 %v307_v51, %v2800_v47  ;;  %v487_v51 = vsel %vm436_vm12, %v3076_v43, %v3074_v41  ;;  %v585_v41 = vsel %vm436_vm12, %v3084_v48, %v3082_v24  ;;  %v660_v24 = vsel %vm658_vm13, %v3092_v55, %v3086_v49 }
 0x249   : > { %v3236_v9 = vpop.permute.xlu0 %1945  ;;  %v359_v20 = vrot.slane %v349_v11, %v2849_v17  ;;  %v758_v49 = vsel %vm658_vm13, %v3098_v61, %v3094_v59 }
 0x24a   : > { %3734 = vst [vmem:[#allocation33_spill] sm:$0xff] %v3236_v9  ;;  %v353_v9 = vrot.slane %v261_v34, %v2852_v18 }
 0x24b   : > { %v364_v42 = vmul.f32 %v359_v20, %v2815_v57 }
 0x24c   : > { %2414 = vset.pattern.permute.xlu1 %v2599_v27  ;;  %v311_v27 = vrot.slane %v301_v35, %v2763_v5  ;;  %v363_v34 = vrot.slane %v353_v9, %v2849_v17  ;;  %v2424_v9 = vld [vmem:[%s3674_s1] sm:$0xf] }
 0x24d   : > { %1651 = vperm.xlu1 %2414, %v2768_v7  }
 0x24e   : > { %v3243_v19 = vpop.permute.xlu0 %2095  ;;  %v313_v35 = vmul.f32 %v311_v27, %v2800_v47  ;;  %v365_v11 = vmul.f32 %v363_v34, %v2815_v57 }
 0x24f   : > { %3735 = vst [vmem:[#allocation34_spill] sm:$0xff] %v3243_v19  ;;  %v281_v19 = vrot.slane %v271_v50, %v2760_v4  ;;  %v2601_v50 = vmov 30  }
 0x251   : > { %2416 = vset.pattern.permute.xlu1 %v2600_v58 }
 0x252   : > { %1775 = vperm.xlu1 %2416, %v2768_v7  }
 0x253   : > { %v265_v18 = vpop.permute.xlu0 %264 }
 0x254   : > { %v286_v58 = vmul.f32 %v281_v19, %v265_v18  ;;  %v287_v5 = vmul.f32 %v285_v2, %v265_v18 }
 0x256   : > { %v314_v7 = vadd.f32 %v312_v23, %v286_v58  ;;  %v315_v0 = vadd.f32 %v313_v35, %v287_v5  ;;  %2417 = vset.pattern.permute.xlu1 %v2601_v50  ;;  %v438_v5 = vsel %vm436_vm12, %v3072_v45, %v3069_v40  ;;  %v536_v40 = vsel %vm436_vm12, %v3080_v46, %v3078_v44 }
 0x257   : > { %1824 = vperm.xlu1 %2417, %v2424_v9   ;;  %v535_v45 = vsel %vm436_vm12, %v3143_v31, %v3080_v46  ;;  %v2603_v23 = vmov 33   ;;  %v3736_v44 = vrot.slane %v3198_v21, 4  ;;  %v1291_v46 = vrot.slane %v3208_v30, %v2808_v53 }
 0x258   : > { %v340_v47 = vadd.f32 %v338_v38, %v314_v7  ;;  %v341_v18 = vadd.f32 %v339_v29, %v315_v0  ;;  %v486_v0 = vsel %vm436_vm12, %v3135_v33, %v3076_v43  ;;  %v584_v43 = vsel %vm436_vm12, %v3145_v56, %v3084_v48  ;;  %v1256_v33 = vld [vmem:[#allocation2 + $0x8] sm:$0xf] }
 0x259   : > { %v3293_v35 = vmul.f32 %v3736_v44, %v1256_v33  ;;  %v659_v38 = vsel %vm658_vm13, %v3088_v39, %v3092_v55  ;;  %v709_v21 = vsel %vm658_vm13, %v3096_v60, %v3090_v52  ;;  %v708_v29 = vsel %vm658_vm13, %v3151_v37, %v3096_v60  ;;  %v3748_v33 = vld [vmem:[#allocation12_spill] sm:$0xff] }
 0x25a   : > { %v366_v2 = vadd.f32 %v364_v42, %v340_v47  ;;  %v367_v26 = vadd.f32 %v365_v11, %v341_v18  ;;  %v2604_v7 = vmov 34   ;;  %v1306_v39 = vrot.slane %v1291_v46, %v2760_v4  ;;  %v3749_v46 = vld [vmem:[#allocation13_spill] sm:$0xff] }
 0x25b   : > { %2418 = vset.pattern.permute.xlu1 %v2602_v1  ;;  %v1295_v50 = vrot.slane %v3293_v35, %v2760_v4  ;;  %v757_v52 = vsel %vm658_vm13, %v3159_v25, %v3098_v61  ;;  %v807_v47 = vsel %vm658_vm13, %v3102_v3, %v3100_v62  ;;  %v882_v61 = vsel %vm880_vm9, %v3108_v63, %v3104_v6  ;;  %v3738_v1 = vld [vmem:[#allocation23_spill] sm:$0xff] }
 0x25c   : > { %v441_v57 = vadd.f32 %v437_v54, %v366_v2  ;;  %v442_v20 = vadd.f32 %v438_v5, %v367_v26  ;;  %1873 = vperm.xlu1 %2418, %v2424_v9   ;;  %v1312_v55 = vmul.f32 %v1306_v39, %v3213_v36  ;;  %v931_v62 = vsel %vm880_vm9, %v3116_v12, %v3106_v10  ;;  %v3739_v10 = vld [vmem:[#allocation18_spill] sm:$0xff]  ;;  %v3751_v39 = vld [vmem:[#allocation15_spill] sm:$0xff] }
 0x25d   : > { %v1310_v18 = vrot.slane %v1295_v50, %v2760_v4  ;;  %v980_v54 = vsel %vm880_vm9, %v3120_v16, %v3114_v14  ;;  %v3744_v14 = vld [vmem:[#allocation25_spill] sm:$0xff]  ;;  %v1337_v44 = vrot.slane %v3208_v30, %v3748_v33 }
 0x25e   : > { %v490_v19 = vadd.f32 %v486_v0, %v441_v57  ;;  %v491_v27 = vadd.f32 %v487_v51, %v442_v20  ;;  %v3740_v51 = vld [vmem:[#allocation19_spill] sm:$0xff] }
 0x25f   : > { %v1313_v25 = vmul.f32 %v1310_v18, %v3213_v36  ;;  %v3737_v36 = vld [vmem:[#allocation17_spill] sm:$0xff] }
 0x260   : > { %v539_v28 = vadd.f32 %v535_v45, %v490_v19  ;;  %v540_v34 = vadd.f32 %v536_v40, %v491_v27  ;;  %2420 = vset.pattern.permute.xlu1 %v2603_v23  ;;  %v3742_v27 = vld [vmem:[#allocation20_spill] sm:$0xff]  ;;  %v3743_v45 = vld [vmem:[#allocation21_spill] sm:$0xff]  ;;  %v3746_v23 = vld [vmem:[#allocation26_spill] sm:$0xff] }
 0x261   : > { %1997 = vperm.xlu1 %2420, %v2424_v9   ;;  %v1200_v16 = vsel %vm1101_vm10, %v3744_v14, %v3743_v45 }
 0x262   : > { %v588_v31 = vadd.f32 %v584_v43, %v539_v28  ;;  %v589_v58 = vadd.f32 %v585_v41, %v540_v34  ;;  %v3745_v28 = vld [vmem:[#allocation22_spill] sm:$0xff]  ;;  %v3747_v41 = vld [vmem:[#allocation27_spill] sm:$0xff] }
 0x264   : > { %v663_v48 = vadd.f32 %v659_v38, %v588_v31  ;;  %v664_v56 = vadd.f32 %v660_v24, %v589_v58  ;;  %v1341_v31 = vrot.slane %v3208_v30, %v3749_v46  ;;  %v3750_v38 = vld [vmem:[#allocation14_spill] sm:$0xff] }
 0x265   : > { %2421 = vset.pattern.permute.xlu1 %v2604_v7  ;;  %v1386_v24 = vrot.slane %v3208_v30, %v3750_v38 }
 0x266   : > { %v712_v42 = vadd.f32 %v708_v29, %v663_v48  ;;  %v713_v11 = vadd.f32 %v709_v21, %v664_v56  ;;  %2046 = vperm.xlu1 %2421, %v2424_v9   ;;  %v806_v9 = vsel %vm658_vm13, %v3164_v32, %v3102_v3  ;;  %v1345_v48 = vrot.slane %v3293_v35, %v3748_v33 }
 0x267   : > { %v1352_v56 = vrot.slane %v1337_v44, %v3748_v33  ;;  %v1356_v21 = vrot.slane %v1341_v31, %v3748_v33  ;;  %v3755_v31 = vld [vmem:[#allocation30_spill] sm:$0xff] }
 0x268   : > { %v761_v60 = vadd.f32 %v757_v52, %v712_v42  ;;  %v762_v37 = vadd.f32 %v758_v49, %v713_v11  ;;  %v1390_v42 = vrot.slane %v3208_v30, %v3751_v39  ;;  %v1394_v11 = vrot.slane %v3293_v35, %v3750_v38 }
 0x269   : > { %v1401_v49 = vrot.slane %v1386_v24, %v3750_v38  ;;  %v1360_v52 = vrot.slane %v1345_v48, %v3748_v33  ;;  %v1715_v24 = vrot.slane %v3755_v31, 4 }
 0x26a   : > { %1319 = vrot.lane.b32.xlu1 %v1312_v55, %s2594_s5  ;;  %v810_v59 = vadd.f32 %v806_v9, %v761_v60  ;;  %v811_v2 = vadd.f32 %v807_v47, %v762_v37  ;;  %v3752_v60 = vld [vmem:[#allocation28_spill] sm:$0xff]  ;;  %v1405_v18 = vrot.slane %v1390_v42, %v3750_v38 }
 0x26b   : > { %v1410_v37 = vmul.f32 %v1401_v49, %v3752_v60 }
 0x26c   : > { %v885_v26 = vadd.f32 %v3112_v13, %v810_v59  ;;  %v886_v5 = vadd.f32 %v882_v61, %v811_v2  ;;  %v1029_v13 = vsel %vm880_vm9, %v3737_v36, %v3118_v15  ;;  %v1409_v59 = vrot.slane %v1394_v11, %v3750_v38  ;;  %v1477_v2 = vld [vmem:[#allocation2] sm:$0xff] }
 0x26e   : > { %1321 = vrot.lane.b32.xlu1 %v1313_v25, %s2594_s5  ;;  %v934_v3 = vadd.f32 %v3169_v22, %v885_v26  ;;  %v935_v32 = vadd.f32 %v931_v62, %v886_v5  ;;  %v3741_v22 = vld [vmem:[#allocation24_spill] sm:$0xff]  ;;  %v1435_v25 = vrot.slane %v3208_v30, %v2849_v17 }
 0x26f   : > { %v3753_v26 = vld [vmem:[#allocation16_spill] sm:$0xff] }
 0x270   : > { %v983_v6 = vadd.f32 %v3174_v8, %v934_v3  ;;  %v984_v63 = vadd.f32 %v980_v54, %v935_v32  ;;  %v1439_v5 = vrot.slane %v3208_v30, %v3753_v26  ;;  %v1411_v32 = vmul.f32 %v1405_v18, %v3752_v60  ;;  %v1700_v18 = vld [vmem:[#allocation2 + $0x8] sm:$0xf] }
 0x271   : > { %v1412_v54 = vmul.f32 %v1409_v59, %v3752_v60  ;;  %v1450_v36 = vrot.slane %v1435_v25, %v2849_v17  ;;  %v3451_v25 = vmul.f32 %v1715_v24, %v1700_v18  ;;  %v1922_v18 = vld [vmem:[#allocation2 + $0x8] sm:$0xf] }
 0x272   : > { %v1032_v57 = vadd.f32 %v3738_v1, %v983_v6  ;;  %v1033_v20 = vadd.f32 %v1029_v13, %v984_v63  ;;  %v1443_v6 = vrot.slane %v3293_v35, %v2849_v17  ;;  %v1478_v63 = vld [vmem:[#allocation2 + $0x8] sm:$0xf]  ;;  %v1454_v13 = vrot.slane %v1439_v5, %v2849_v17 }
 0x274   : > { %v1106_v12 = vadd.f32 %v3739_v10, %v1032_v57  ;;  %v1107_v0 = vadd.f32 %v3740_v51, %v1033_v20  ;;  %v1458_v35 = vrot.slane %v1443_v6, %v2849_v17 }
 0x276   : > { %v1155_v19 = vadd.f32 %v3741_v22, %v1106_v12  ;;  %v1156_v40 = vadd.f32 %v3742_v27, %v1107_v0 }
 0x278   : > { %v1204_v8 = vadd.f32 %v1200_v16, %v1155_v19  ;;  %v1205_v34 = vadd.f32 %v3745_v28, %v1156_v40  ;;  %v3754_v40 = vld [vmem:[#allocation29_spill] sm:$0xff] }
 0x27a   : > { %v3354_v15 = vadd.f32 %v3746_v23, %v1204_v8  ;;  %v3357_v43 = vadd.f32 %v3747_v41, %v1205_v34 }
 0x2a4   : > { %v3363_v58 = vpop.permute.xlu1 %1317 }
 0x2b1   : > { %v1332_v29 = vpop.permute.xlu1 %1331 }
 0x2b2   : > { %v1361_v7 = vmul.f32 %v1352_v56, %v1332_v29  ;;  %v1362_v50 = vmul.f32 %v1356_v21, %v1332_v29  ;;  %v1363_v47 = vmul.f32 %v1360_v52, %v1332_v29 }
 0x2b4   : > { %1369 = vrot.lane.b32.xlu1 %v1362_v50, %s2594_s5  ;;  %1367 = vrot.lane.b32.xlu0 %v1361_v7, %s2594_s5  ;;  %v1717_v50 = vsel %vm1716_vm15, %v1715_v24, %v3755_v31 }
 0x2b5   : > { %v1492_v55 = vpop.permute.xlu1 %1491 }
 0x2b6   : > { %v1493_v9 = vrot.slane %v1492_v55, 4 }
 0x2b8   : > { %v1495_v61 = vsel %vm1494_vm14, %v1493_v9, %v1492_v55  ;;  %1371 = vrot.lane.b32.xlu0 %v1363_v47, %s2594_s5  ;;  %1416 = vrot.lane.b32.xlu1 %v1410_v37, %s2594_s5  ;;  %v3400_v1 = vmul.f32 %v1493_v9, %v1478_v63  ;;  %v2425_v55 = vld [vmem:[#allocation2] sm:$0xff] }
 0x2b9   : > { %v3388_v62 = vmul.f32 %v1495_v61, %v1477_v2  ;;  %v1430_v3 = vpop.permute.xlu1 %1429  ;;  %v3441_v60 = vmul.f32 %v2425_v55, %v1717_v50 }
 0x2ba   : > { %v1459_v57 = vmul.f32 %v1450_v36, %v1430_v3  ;;  %v1460_v20 = vmul.f32 %v1454_v13, %v1430_v3  ;;  %v1517_v0 = vrot.slane %v3400_v1, %v2760_v4  ;;  %v1461_v22 = vmul.f32 %v1458_v35, %v1430_v3 }
 0x2bb   : > { %v1509_v30 = vrot.slane %v3388_v62, %v2760_v4  ;;  %v1513_v51 = vrot.slane %v3388_v62, %v2808_v53  ;;  %v1559_v19 = vrot.slane %v3388_v62, %v3748_v33  ;;  %v1563_v27 = vrot.slane %v3388_v62, %v3749_v46 }
 0x2bc   : > { %1418 = vrot.lane.b32.xlu0 %v1411_v32, %s2594_s5  ;;  %1420 = vrot.lane.b32.xlu1 %v1412_v54, %s2594_s5  ;;  %v1532_v8 = vrot.slane %v1517_v0, %v2760_v4  ;;  %v1567_v28 = vrot.slane %v3400_v1, %v3748_v33  ;;  %v1608_v48 = vrot.slane %v3388_v62, %v3750_v38 }
 0x2bd   : > { %v1524_v12 = vrot.slane %v1509_v30, %v2760_v4  ;;  %v1528_v16 = vrot.slane %v1513_v51, %v2760_v4  ;;  %v1574_v34 = vrot.slane %v1559_v19, %v3748_v33  ;;  %v1578_v23 = vrot.slane %v1563_v27, %v3748_v33  ;;  %v3756_v51 = vld [vmem:[#allocation31_spill] sm:$0xff] }
 0x2be   : > { %v1554_v10 = vpop.permute.xlu1 %1553  ;;  %v1535_v44 = vmul.f32 %v1532_v8, %v3754_v40  ;;  %v1582_v21 = vrot.slane %v1567_v28, %v3748_v33  ;;  %v1612_v42 = vrot.slane %v3388_v62, %v3751_v39  ;;  %v1616_v11 = vrot.slane %v3400_v1, %v3750_v38 }
 0x2bf   : > { %v1533_v45 = vmul.f32 %v1524_v12, %v3754_v40  ;;  %v1534_v41 = vmul.f32 %v1528_v16, %v3754_v40  ;;  %v1583_v29 = vmul.f32 %v1574_v34, %v1554_v10  ;;  %v1584_v7 = vmul.f32 %v1578_v23, %v1554_v10  ;;  %v3757_v16 = vld [vmem:[#allocation32_spill] sm:$0xff] }
 0x2c0   : > { %1465 = vrot.lane.b32.xlu0 %v1459_v57, %s2594_s5  ;;  %1467 = vrot.lane.b32.xlu1 %v1460_v20, %s2594_s5  ;;  %v1623_v49 = vrot.slane %v1608_v48, %v3750_v38  ;;  %v1585_v37 = vmul.f32 %v1582_v21, %v1554_v10  ;;  %v1627_v9 = vrot.slane %v1612_v42, %v3750_v38  ;;  %v1937_v8 = vrot.slane %v3757_v16, 4 }
 0x2c1   : > { %v1631_v59 = vrot.slane %v1616_v11, %v3750_v38  ;;  %v1657_v2 = vrot.slane %v3388_v62, %v2849_v17  ;;  %v1661_v61 = vrot.slane %v3388_v62, %v3753_v26  ;;  %v1731_v5 = vrot.slane %v3441_v60, %v2760_v4 }
 0x2c2   : > { %v1665_v6 = vrot.slane %v3400_v1, %v2849_v17  ;;  %v1739_v36 = vrot.slane %v3451_v25, %v2760_v4  ;;  %v1735_v13 = vrot.slane %v3441_v60, %v2808_v53  ;;  %v1781_v19 = vrot.slane %v3441_v60, %v3748_v33 }
 0x2c3   : > { %v1603_v14 = vpop.permute.xlu1 %1602  ;;  %v1672_v63 = vrot.slane %v1657_v2, %v2849_v17  ;;  %v1676_v62 = vrot.slane %v1661_v61, %v2849_v17  ;;  %v1746_v30 = vrot.slane %v1731_v5, %v2760_v4  ;;  %v1785_v27 = vrot.slane %v3441_v60, %v3749_v46 }
 0x2c4   : > { %1469 = vrot.lane.b32.xlu0 %v1461_v22, %s2594_s5  ;;  %1539 = vrot.lane.b32.xlu1 %v1533_v45, %s2605_s26  ;;  %v1632_v47 = vmul.f32 %v1623_v49, %v1603_v14  ;;  %v1633_v3 = vmul.f32 %v1627_v9, %v1603_v14  ;;  %v1634_v32 = vmul.f32 %v1631_v59, %v1603_v14  ;;  %s2176_s5 = scalar_lea.hbm %s3677_s4, %s2275_s12 }
 0x2c5   : > { %v1680_v1 = vrot.slane %v1665_v6, %v2849_v17  ;;  %v1750_v12 = vrot.slane %v1735_v13, %v2760_v4  ;;  %v1754_v35 = vrot.slane %v1739_v36, %v2760_v4  ;;  %v1755_v0 = vmul.f32 %v1746_v30, %v3756_v51 }
 0x2c6   : > { %v1789_v28 = vrot.slane %v3451_v25, %v3748_v33  ;;  %v1796_v34 = vrot.slane %v1781_v19, %v3748_v33  ;;  %v1800_v23 = vrot.slane %v1785_v27, %v3748_v33  ;;  %v1939_v48 = vsel %vm1938_vm0, %v1937_v8, %v3757_v16 }
 0x2c7   : > { %v1756_v45 = vmul.f32 %v1750_v12, %v3756_v51  ;;  %v1757_v14 = vmul.f32 %v1754_v35, %v3756_v51  ;;  %v3508_v42 = vmul.f32 %v2425_v55, %v1939_v48  ;;  %v1879_v2 = vrot.slane %v3441_v60, %v2849_v17 }
 0x2c8   : > { %v1652_v56 = vpop.permute.xlu1 %1651  ;;  %1541 = vrot.lane.b32.xlu0 %v1534_v41, %s2605_s26  ;;  %1543 = vrot.lane.b32.xlu1 %v1535_v44, %s2605_s26  ;;  %v1830_v41 = vrot.slane %v3441_v60, %v3750_v38  ;;  %v1804_v21 = vrot.slane %v1789_v28, %v3748_v33  ;;  %v1883_v55 = vrot.slane %v3441_v60, %v3753_v26 }
 0x2c9   : > { %v1681_v57 = vmul.f32 %v1672_v63, %v1652_v56  ;;  %v1682_v20 = vmul.f32 %v1676_v62, %v1652_v56  ;;  %v1683_v22 = vmul.f32 %v1680_v1, %v1652_v56  ;;  %v1834_v56 = vrot.slane %v3441_v60, %v3751_v39 }
 0x2ca   : > { %v1953_v61 = vrot.slane %v3508_v42, %v2760_v4  ;;  %v1887_v60 = vrot.slane %v3451_v25, %v2849_v17  ;;  %v1894_v6 = vrot.slane %v1879_v2, %v2849_v17  ;;  %v1898_v63 = vrot.slane %v1883_v55, %v2849_v17 }
 0x2cb   : > { %v2003_v12 = vrot.slane %v3508_v42, %v3748_v33  ;;  %v2007_v35 = vrot.slane %v3508_v42, %v3749_v46  ;;  %v2052_v19 = vrot.slane %v3508_v42, %v3750_v38  ;;  %v2101_v28 = vrot.slane %v3508_v42, %v2849_v17 }
 0x2cc   : > { %1589 = vrot.lane.b32.xlu0 %v1583_v29, %s2605_s26  ;;  %1591 = vrot.lane.b32.xlu1 %v1584_v7, %s2605_s26  ;;  %v1838_v29 = vrot.slane %v3451_v25, %v3750_v38  ;;  %v1845_v7 = vrot.slane %v1830_v41, %v3750_v38  ;;  %v1968_v36 = vrot.slane %v1953_v61, %v2760_v4 }
 0x2cd   : > { %v3439_v52 = vpop.permute.xlu1 %1775  ;;  %v1902_v25 = vrot.slane %v1887_v60, %v2849_v17 }
 0x2ce   : > { %v1805_v31 = vmul.f32 %v1796_v34, %v3439_v52  ;;  %v1806_v24 = vmul.f32 %v1800_v23, %v3439_v52  ;;  %v1807_v11 = vmul.f32 %v1804_v21, %v3439_v52  ;;  %v1853_v59 = vrot.slane %v1838_v29, %v3750_v38  ;;  %v3759_v29 = vld [vmem:[#allocation34_spill] sm:$0xff] }
 0x2cf   : > { %v1943_v52 = vmul.f32 %v1937_v8, %v1922_v18  ;;  %v2067_v8 = vrot.slane %v2052_v19, %v3750_v38 }
 0x2d0   : > { %1593 = vrot.lane.b32.xlu0 %v1585_v37, %s2605_s26  ;;  %1638 = vrot.lane.b32.xlu1 %v1632_v47, %s2605_s26  ;;  %v1849_v47 = vrot.slane %v1834_v56, %v3750_v38 }
 0x2d1   : > { %v1961_v62 = vrot.slane %v1943_v52, %v2760_v4  ;;  %v2060_v16 = vrot.slane %v1943_v52, %v3750_v38 }
 0x2d2   : > { %v3455_v54 = vpop.permute.xlu1 %1824 }
 0x2d3   : > { %v1854_v49 = vmul.f32 %v1845_v7, %v3455_v54  ;;  %v1856_v5 = vmul.f32 %v1853_v59, %v3455_v54  ;;  %v2075_v41 = vrot.slane %v2060_v16, %v3750_v38 }
 0x2d4   : > { %1640 = vrot.lane.b32.xlu0 %v1633_v3, %s2605_s26  ;;  %1642 = vrot.lane.b32.xlu1 %v1634_v32, %s2605_s26 }
 0x2d7   : > { %v3468_v10 = vpop.permute.xlu1 %1873 }
 0x2d8   : > { %1687 = vrot.lane.b32.xlu0 %v1681_v57, %s2605_s26  ;;  %1689 = vrot.lane.b32.xlu1 %v1682_v20, %s2605_s26  ;;  %v1904_v13 = vmul.f32 %v1898_v63, %v3468_v10  ;;  %v1976_v57 = vrot.slane %v1961_v62, %v2760_v4  ;;  %v3758_v20 = vld [vmem:[#allocation33_spill] sm:$0xff] }
 0x2d9   : > { %v1977_v1 = vmul.f32 %v1968_v36, %v3758_v20 }
 0x2dc   : > { %v3480_v40 = vpop.permute.xlu1 %1997  ;;  %1691 = vrot.lane.b32.xlu0 %v1683_v22, %s2605_s26  ;;  %1761 = vrot.lane.b32.xlu1 %v1755_v0, %s2606_s28  ;;  %v1979_v0 = vmul.f32 %v1976_v57, %v3758_v20  ;;  %v2018_v22 = vrot.slane %v2003_v12, %v3748_v33 }
 0x2de   : > { %v2027_v46 = vmul.f32 %v2018_v22, %v3480_v40 }
 0x2e0   : > { %1763 = vrot.lane.b32.xlu0 %v1756_v45, %s2606_s28  ;;  %1765 = vrot.lane.b32.xlu1 %v1757_v14, %s2606_s28  ;;  %v2056_v14 = vrot.slane %v3508_v42, %v3751_v39  ;;  %v2109_v39 = vrot.slane %v1943_v52, %v2849_v17 }
 0x2e1   : > { %v3495_v44 = vpop.permute.xlu1 %2046 }
 0x2e2   : > { %v2076_v23 = vmul.f32 %v2067_v8, %v3495_v44  ;;  %v2124_v21 = vrot.slane %v2109_v39, %v2849_v17 }
 0x2e4   : > { %1811 = vrot.lane.b32.xlu0 %v1805_v31, %s2606_s28  ;;  %1813 = vrot.lane.b32.xlu1 %v1806_v24, %s2606_s28  ;;  %v2105_v31 = vrot.slane %v3508_v42, %v3753_v26  ;;  %v2116_v24 = vrot.slane %v2101_v28, %v2849_v17 }
 0x2e5   : > { %v1320_v50 = vpop.permute.xlu1 %1319 }
 0x2e6   : > { %v1324_v37 = vsel %vm1323_vm1, %v3363_v58, %v1320_v50  ;;  %v2120_v56 = vrot.slane %v2105_v31, %v2849_v17  ;;  %v2125_v26 = vmul.f32 %v2116_v24, %v3759_v29 }
 0x2e7   : > { %v3516_v9 = vadd.f32 %v1324_v37, %v3354_v15  ;;  %v1855_v15 = vmul.f32 %v1849_v47, %v3455_v54  ;;  %v1957_v54 = vrot.slane %v3508_v42, %v2808_v53  ;;  %v1905_v53 = vmul.f32 %v1902_v25, %v3468_v10 }
 0x2e8   : > { %1815 = vrot.lane.b32.xlu0 %v1807_v11, %s2606_s28  ;;  %1860 = vrot.lane.b32.xlu1 %v1854_v49, %s2606_s28  ;;  %v2126_v7 = vmul.f32 %v2120_v56, %v3759_v29 }
 0x2e9   : > { %v1322_v58 = vpop.permute.xlu1 %1321  ;;  %v1972_v30 = vrot.slane %v1957_v54, %v2760_v4  ;;  %v2011_v4 = vrot.slane %v1943_v52, %v3748_v33 }
 0x2ea   : > { %v1325_v3 = vsel %vm1323_vm1, %v1320_v50, %v1322_v58 }
 0x2eb   : > { %v3531_v32 = vadd.f32 %v1325_v3, %v3357_v43  ;;  %v1903_v43 = vmul.f32 %v1894_v6, %v3468_v10  ;;  %v1978_v51 = vmul.f32 %v1972_v30, %v3758_v20  ;;  %v2022_v10 = vrot.slane %v2007_v35, %v3748_v33 }
 0x2ec   : > { %1862 = vrot.lane.b32.xlu0 %v1855_v15, %s2606_s28  ;;  %1864 = vrot.lane.b32.xlu1 %v1856_v5, %s2606_s28  ;;  %v2026_v45 = vrot.slane %v2011_v4, %v3748_v33  ;;  %v2071_v33 = vrot.slane %v2056_v14, %v3750_v38  ;;  %v2143_v38 = vld [vmem:[%s3675_s2] sm:$0xf] }
 0x2ed   : > { %v2028_v27 = vmul.f32 %v2022_v10, %v3480_v40 }
 0x2ee   : > { %v2029_v34 = vmul.f32 %v2026_v45, %v3480_v40  ;;  %v2077_v48 = vmul.f32 %v2071_v33, %v3495_v44  ;;  %v2078_v40 = vmul.f32 %v2075_v41, %v3495_v44  ;;  %v2127_v44 = vmul.f32 %v2124_v21, %v3759_v29 }
 0x2f0   : > { %1909 = vrot.lane.b32.xlu0 %v1903_v43, %s2606_s28  ;;  %1911 = vrot.lane.b32.xlu1 %v1904_v13, %s2606_s28 }
 0x2f4   : > { %1913 = vrot.lane.b32.xlu0 %v1905_v53, %s2606_s28  ;;  %1983 = vrot.lane.b32.xlu1 %v1977_v1, %s2607_s29 }
 0x2f8   : > { %1985 = vrot.lane.b32.xlu0 %v1978_v51, %s2607_s29  ;;  %1987 = vrot.lane.b32.xlu1 %v1979_v0, %s2607_s29 }
 0x2fc   : > { %2033 = vrot.lane.b32.xlu0 %v2027_v46, %s2607_s29  ;;  %2035 = vrot.lane.b32.xlu1 %v2028_v27, %s2607_s29 }
 0x300   : > { %2037 = vrot.lane.b32.xlu0 %v2029_v34, %s2607_s29  ;;  %2082 = vrot.lane.b32.xlu1 %v2076_v23, %s2607_s29 }
 0x304   : > { %2084 = vrot.lane.b32.xlu0 %v2077_v48, %s2607_s29  ;;  %2086 = vrot.lane.b32.xlu1 %v2078_v40, %s2607_s29 }
 0x308   : > { %2146 = vperm.xlu0 %2423, %v2143_v38   ;;  %2131 = vrot.lane.b32.xlu1 %v2125_v26, %s2607_s29 }
 0x30c   : > { %2135 = vrot.lane.b32.xlu0 %v2127_v44, %s2607_s29  ;;  %2133 = vrot.lane.b32.xlu1 %v2126_v7, %s2607_s29 }
 0x326   : > { %v1370_v50 = vpop.permute.xlu1 %1369  ;;  %v1368_v42 = vpop.permute.xlu0 %1367 }
 0x327   : > { %v1373_v35 = vsel %vm1323_vm1, %v1368_v42, %v1370_v50 }
 0x328   : > { %v1377_v22 = vadd.f32 %v1373_v35, %v3516_v9 }
 0x32a   : > { %v1417_v11 = vpop.permute.xlu1 %1416  ;;  %v1372_v49 = vpop.permute.xlu0 %1371 }
 0x32b   : > { %v1374_v10 = vsel %vm1323_vm1, %v1370_v50, %v1372_v49 }
 0x32c   : > { %v1378_v8 = vadd.f32 %v1374_v10, %v3531_v32 }
 0x32e   : > { %v1421_v37 = vpop.permute.xlu1 %1420  ;;  %v1419_v47 = vpop.permute.xlu0 %1418 }
 0x32f   : > { %v1422_v4 = vsel %vm1323_vm1, %v1417_v11, %v1419_v47  ;;  %v1423_v14 = vsel %vm1323_vm1, %v1419_v47, %v1421_v37 }
 0x330   : > { %v1426_v27 = vadd.f32 %v1422_v4, %v1377_v22  ;;  %v1427_v33 = vadd.f32 %v1423_v14, %v1378_v8 }
 0x332   : > { %v1468_v17 = vpop.permute.xlu1 %1467  ;;  %v1466_v18 = vpop.permute.xlu0 %1465 }
 0x333   : > { %v1471_v19 = vsel %vm1323_vm1, %v1466_v18, %v1468_v17 }
 0x334   : > { %v1475_v28 = vadd.f32 %v1471_v19, %v1426_v27 }
 0x336   : > { %v1540_v59 = vpop.permute.xlu1 %1539  ;;  %v1470_v2 = vpop.permute.xlu0 %1469 }
 0x337   : > { %v1472_v34 = vsel %vm1323_vm1, %v1468_v17, %v1470_v2 }
 0x338   : > { %v1476_v24 = vadd.f32 %v1472_v34, %v1427_v33  ;;  %v2426_v33 = vld [vmem:[%s2747_s6] sm:$0xff] }
 0x33a   : > { %v1544_v55 = vpop.permute.xlu1 %1543  ;;  %v1542_v52 = vpop.permute.xlu0 %1541 }
 0x33b   : > { %v1546_v16 = vsel %vm1545_vm2, %v1540_v59, %v1542_v52  ;;  %v1547_v39 = vsel %vm1545_vm2, %v1542_v52, %v1544_v55 }
 0x33c   : > { %v1550_v41 = vadd.f32 %v1546_v16, %v1475_v28  ;;  %v1551_v21 = vadd.f32 %v1547_v39, %v1476_v24 }
 0x33e   : > { %v1592_v58 = vpop.permute.xlu1 %1591  ;;  %v1590_v61 = vpop.permute.xlu0 %1589 }
 0x33f   : > { %v1595_v23 = vsel %vm1545_vm2, %v1590_v61, %v1592_v58 }
 0x340   : > { %v1599_v48 = vadd.f32 %v1595_v23, %v1550_v41 }
 0x342   : > { %v1639_v15 = vpop.permute.xlu1 %1638  ;;  %v1594_v5 = vpop.permute.xlu0 %1593 }
 0x343   : > { %v1596_v38 = vsel %vm1545_vm2, %v1592_v58, %v1594_v5 }
 0x344   : > { %v1600_v44 = vadd.f32 %v1596_v38, %v1551_v21 }
 0x346   : > { %v1643_v3 = vpop.permute.xlu1 %1642  ;;  %v1641_v60 = vpop.permute.xlu0 %1640 }
 0x347   : > { %v1644_v31 = vsel %vm1545_vm2, %v1639_v15, %v1641_v60  ;;  %v1645_v26 = vsel %vm1545_vm2, %v1641_v60, %v1643_v3 }
 0x348   : > { %v1648_v29 = vadd.f32 %v1644_v31, %v1599_v48  ;;  %v1649_v37 = vadd.f32 %v1645_v26, %v1600_v44 }
 0x34a   : > { %v1690_v6 = vpop.permute.xlu1 %1689  ;;  %v1688_v63 = vpop.permute.xlu0 %1687 }
 0x34b   : > { %v1693_v32 = vsel %vm1545_vm2, %v1688_v63, %v1690_v6 }
 0x34c   : > { %v1697_v50 = vadd.f32 %v1693_v32, %v1648_v29 }
 0x34e   : > { %v1762_v62 = vpop.permute.xlu1 %1761  ;;  %v1692_v54 = vpop.permute.xlu0 %1691 }
 0x34f   : > { %v1694_v42 = vsel %vm1545_vm2, %v1690_v6, %v1692_v54 }
 0x350   : > { %v1698_v2 = vadd.f32 %v1694_v42, %v1649_v37 }
 0x352   : > { %v1766_v36 = vpop.permute.xlu1 %1765  ;;  %v1764_v43 = vpop.permute.xlu0 %1763 }
 0x353   : > { %v1768_v7 = vsel %vm1767_vm3, %v1762_v62, %v1764_v43  ;;  %v1769_v18 = vsel %vm1767_vm3, %v1764_v43, %v1766_v36 }
 0x354   : > { %v1772_v47 = vadd.f32 %v1768_v7, %v1697_v50  ;;  %v1773_v15 = vadd.f32 %v1769_v18, %v1698_v2 }
 0x356   : > { %v1814_v13 = vpop.permute.xlu1 %1813  ;;  %v1812_v25 = vpop.permute.xlu0 %1811 }
 0x357   : > { %v1817_v11 = vsel %vm1767_vm3, %v1812_v25, %v1814_v13 }
 0x358   : > { %v1821_v55 = vadd.f32 %v1817_v11, %v1772_v47 }
 0x35a   : > { %v1861_v30 = vpop.permute.xlu1 %1860  ;;  %v1816_v57 = vpop.permute.xlu0 %1815 }
 0x35b   : > { %v1818_v52 = vsel %vm1767_vm3, %v1814_v13, %v1816_v57 }
 0x35c   : > { %v1822_v6 = vadd.f32 %v1818_v52, %v1773_v15 }
 0x35e   : > { %v1865_v20 = vpop.permute.xlu1 %1864  ;;  %v1863_v1 = vpop.permute.xlu0 %1862 }
 0x35f   : > { %v1866_v59 = vsel %vm1767_vm3, %v1861_v30, %v1863_v1  ;;  %v1867_v3 = vsel %vm1767_vm3, %v1863_v1, %v1865_v20 }
 0x360   : > { %v1870_v5 = vadd.f32 %v1866_v59, %v1821_v55  ;;  %v1871_v43 = vadd.f32 %v1867_v3, %v1822_v6 }
 0x362   : > { %v1912_v53 = vpop.permute.xlu1 %1911  ;;  %v1910_v12 = vpop.permute.xlu0 %1909 }
 0x363   : > { %v1915_v58 = vsel %vm1767_vm3, %v1910_v12, %v1912_v53 }
 0x364   : > { %v1919_v63 = vadd.f32 %v1915_v58, %v1870_v5 }
 0x366   : > { %v1984_v51 = vpop.permute.xlu1 %1983  ;;  %v1914_v0 = vpop.permute.xlu0 %1913 }
 0x367   : > { %v1916_v54 = vsel %vm1767_vm3, %v1912_v53, %v1914_v0 }
 0x368   : > { %v1920_v12 = vadd.f32 %v1916_v54, %v1871_v43 }
 0x36a   : > { %v1988_v46 = vpop.permute.xlu1 %1987  ;;  %v1986_v45 = vpop.permute.xlu0 %1985 }
 0x36b   : > { %v1990_v60 = vsel %vm1989_vm4, %v1984_v51, %v1986_v45  ;;  %v1991_v13 = vsel %vm1989_vm4, %v1986_v45, %v1988_v46 }
 0x36c   : > { %v1994_v25 = vadd.f32 %v1990_v60, %v1919_v63  ;;  %v1995_v51 = vadd.f32 %v1991_v13, %v1920_v12 }
 0x36e   : > { %v2036_v9 = vpop.permute.xlu1 %2035  ;;  %v2034_v40 = vpop.permute.xlu0 %2033 }
 0x36f   : > { %v2039_v36 = vsel %vm1989_vm4, %v2034_v40, %v2036_v9 }
 0x370   : > { %v2043_v35 = vadd.f32 %v2039_v36, %v1994_v25 }
 0x372   : > { %v2083_v56 = vpop.permute.xlu1 %2082  ;;  %v2038_v17 = vpop.permute.xlu0 %2037 }
 0x373   : > { %v2040_v20 = vsel %vm1989_vm4, %v2036_v9, %v2038_v17 }
 0x374   : > { %v2044_v0 = vadd.f32 %v2040_v20, %v1995_v51 }
 0x376   : > { %v2087_v49 = vpop.permute.xlu1 %2086  ;;  %v2085_v62 = vpop.permute.xlu0 %2084 }
 0x377   : > { %v2088_v57 = vsel %vm1989_vm4, %v2083_v56, %v2085_v62  ;;  %v2089_v53 = vsel %vm1989_vm4, %v2085_v62, %v2087_v49 }
 0x378   : > { %v2092_v4 = vadd.f32 %v2088_v57, %v2043_v35  ;;  %v2093_v19 = vadd.f32 %v2089_v53, %v2044_v0 }
 0x37a   : > { %v2132_v61 = vpop.permute.xlu1 %2131 }
 0x37e   : > { %v2134_v30 = vpop.permute.xlu1 %2133 }
 0x37f   : > { %v2137_v1 = vsel %vm1989_vm4, %v2132_v61, %v2134_v30 }
 0x380   : > { %v2141_v10 = vadd.f32 %v2137_v1, %v2092_v4 }
 0x383   : > { %v2147_v22 = vpop.permute.xlu0 %2146 }
 0x384   : > { %v2149_v46 = vadd.f32 %v2147_v22, %v2141_v10 }
 0x386   : > { %v2153_v16 = vmul.f32 0.1, %v2149_v46  ;;  %vm2151_vm5 = vcmp.gt.f32.partialorder %v2149_v46, 0.0 }
 0x387   : > { %v2136_v27 = vpop.permute.xlu0 %2135 }
 0x388   : > { %v2138_v45 = vsel %vm1989_vm4, %v2134_v30, %v2136_v27  ;;  %v2155_v34 = vsel %vm2151_vm5, %v2149_v46, %v2153_v16 }
 0x389   : > { %v2142_v14 = vadd.f32 %v2138_v45, %v2093_v19 }
 0x38b   : > { %v2150_v8 = vadd.f32 %v2147_v22, %v2142_v14 }
 0x38d   : > { %vm2152_vm6 = vcmp.gt.f32.partialorder %v2150_v8, 0.0  ;;  %v2154_v28 = vmul.f32 0.1, %v2150_v8 }
 0x38f   : > { %v2156_v23 = vsel %vm2152_vm6, %v2150_v8, %v2154_v28 }
 0x390   : > { %v2159_v9 = vcombine.low %v2155_v34, %v2156_v23 }
 0x392   : > { %v2161_v41 = vadd.f32 %v2426_v33, %v2159_v9 }
 0x394   : > { %2162 = vst [vmem:[%s228_s13] sm:$0xff] %v2161_v41 }
 0x395   : > { %2494 = shalt.err (!%p2491_p0)
}
 0x396   : > { %s2495_s6 = scalar_lea.hbm %s2176_s5, 128  ;;  %s2499_s28 = scalar_lea.hbm %s3677_s4, 256 }
 0x397   : > { %p2496_p5 = scmp.ne.s32.totalorder %s2176_s5, %s2495_s6  ;;  %p2500_p1 = scmp.lt.s32.totalorder %s2176_s5, %s3677_s4 }
 0x398   : > { %p2501_p4 = scmp.lt.s32.totalorder %s2499_s28, %s2495_s6 }
 0x399   : > { %p2497_p9 = pnand %p2496_p5, %p3760_p3 }
 0x39a   : > { %p2502_p6 = por %p2501_p4, %p2500_p1 }
 0x39b   : > { %p2498_p12 = pneg %p2497_p9 }
 0x39d   : > { %p2503_p8 = pnand %p2502_p6, %p2498_p12 }
 0x39f   : > { %2506 = shalt.err (!%p2503_p8)
}
 0x3a0   : > { %2282 = dma.vmem_to_hbm [thread:$0]  (%p3760_p3), %s2179_s11, 128, %s2176_s5, %s2164_s21  }
 0x3a1 PF: > { %s2190_s8 = sand.u32 1, %s2537_s15   ;;  %p3761_p11 = scmp.ne.s32.totalorder %s3703_s22, 0 }
 0x3a2   : > { %p3762_p7 = scmp.ge.s32.totalorder %s2549_s18, 2  ;;  %s2191_s12 = scalar_lea.sflag [#allocation5], %s2190_s8 }
 0x3a4   : > { %p2293_p10 = pnand %p3762_p7, %p3761_p11 }
 0x3a6   : > { %p2294_p2 = pneg %p2293_p10 }
 0x3a8   : > { %2532 = dma.done.wait (%p2294_p2), %s2191_s12, 128  }
 0x3a9   : > { %2534 = vsyncadd (%p2294_p2), %s2191_s12, 4294967168  ;;  %p18_p13 = scmp.ge.s32.totalorder %s2688_s27, 4   ;;  %s3763_s15 = smov %s2541_s16 }
 0x3aa   : > { %s3764_s16 = smov %s2545_s17  ;;  %s3765_s17 = smov %s2705_s9 }
 0x3ab   : > { %s3766_s18 = smov %s2688_s27  ;;  %20 = sbr.rel (!%p18_p13) target bundleno = 6 (0x6), region = 93 }
 0x3b0   :  { %2196 = vsyncpa [#allocation4], 1 }
 0x3b1   :  { %2198 = vsyncpa [#allocation4 + $0x1], 1 }
 0x3b2   :  { %2199 = vsyncpa [#allocation7], 1 }
 0x3b3   :  { %2200 = vsyncpa [#allocation5], 1 }
 0x3b4   :  { %2202 = vsyncpa [#allocation5 + $0x1], 1 }

</bundles_post_ra>
